<compile_context>
chip_gen: v7x
topology: tpu7x:2x2x1
jax: 0.10.0
libtpu: 0.0.40
codegen_flags: <defaults>
</compile_context>

<pallas_src>
import functools

import jax
import jax.numpy as jnp
from jax import lax
from jax.experimental import pallas as pl
from jax.experimental.pallas import tpu as pltpu

# ----------------------- config (small, consistent with the module) -----------------------
NUM_LAYERS = 2
EMBED_DIM = 64          # hidden_size
HEADS = 4               # num_attention_heads
INTERMEDIATE = 128      # intermediate_size
VOCAB_SIZE = 128        # synthetic small vocab (default 49408 in module)
NUM_POSITIONS = 8       # synthetic small seq length (default 77 in module)
BATCH = 2
EPS = 1e-5              # torch.nn.LayerNorm default eps
NEG_MASK = -1e9         # finite "minus infinity" for the causal mask


# ------------------------------------ kernel helpers --------------------------------------
def _layernorm(x, w, b):
    mu = jnp.mean(x, axis=-1, keepdims=True)
    var = jnp.mean(jnp.square(x - mu), axis=-1, keepdims=True)
    return (x - mu) * lax.rsqrt(var + EPS) * w + b


def clip_layer_kernel(x_ref,
                      ln1w_ref, ln1b_ref,
                      qkvw_ref, qkvb_ref,
                      ow_ref, ob_ref,
                      ln2w_ref, ln2b_ref,
                      f1w_ref, f1b_ref,
                      f2w_ref, f2b_ref,
                      flnw_ref, flnb_ref,
                      *rest,
                      num_layers, heads, inter_layer, ln_intermediate):
    """One grid step = one (batch element, encoder layer)."""
    if inter_layer is None:
        out_ref, x_sc = rest
        inter_ref = None
    else:
        out_ref, inter_ref, x_sc = rest

    layer = pl.program_id(1)

    # Load the embeddings into the residual-stream scratch at the first layer.
    @pl.when(layer == 0)
    def _():
        x_sc[...] = x_ref[...]

    x = x_sc[...]                                   # (T, D) f32 residual stream
    T, D = x.shape

    # (T, T) causal mask; broadcast over heads at the add (tiny VPU work per step).
    r = lax.broadcasted_iota(jnp.int32, (T, T), 0)
    c = lax.broadcasted_iota(jnp.int32, (T, T), 1)
    mask = jnp.where(c > r, jnp.float32(NEG_MASK), jnp.float32(0.0))[None]   # (1, T, T)

    # ---------------- attention block ----------------
    h = _layernorm(x, ln1w_ref[...], ln1b_ref[...])                 # f32
    hb = jnp.broadcast_to(h.astype(jnp.bfloat16)[None], (3 * heads, T, D))
    # (3H, T, D) @ (3H, D, hd) batched matmul -> per-head q/k/v, no lane slicing/concats.
    qkv = jnp.einsum('ntd,ndf->ntf', hb, qkvw_ref[...],
                     preferred_element_type=jnp.float32)
    qkv = qkv + qkvb_ref[...][:, None, :]                           # (3H, T, hd) f32
    q = qkv[0:heads].astype(jnp.bfloat16)          # softmax scale pre-folded into q w/b
    k = qkv[heads:2 * heads].astype(jnp.bfloat16)
    v = qkv[2 * heads:3 * heads].astype(jnp.bfloat16)

    s = jnp.einsum('htf,hsf->hts', q, k,
                   preferred_element_type=jnp.float32) + mask       # (H, T, T) f32
    s = s - jnp.max(s, axis=-1, keepdims=True)
    p = jnp.exp(s)
    p = p * pl.reciprocal(jnp.sum(p, axis=-1, keepdims=True), approx=True)
    o = jnp.einsum('hts,hsf->htf', p.astype(jnp.bfloat16), v,
                   preferred_element_type=jnp.float32)              # (H, T, hd)

    # fused "concat heads + out_proj": batched (H,T,hd)@(H,hd,D), then sum over heads.
    attn_hd = jnp.einsum('htf,hfd->htd', o.astype(jnp.bfloat16), ow_ref[...],
                         preferred_element_type=jnp.float32)        # (H, T, D)
    attn = attn_hd[0]
    for hi in range(1, heads):
        attn = attn + attn_hd[hi]
    attn = attn + ob_ref[...]
    x = x + attn

    # ---------------- MLP block ----------------
    h = _layernorm(x, ln2w_ref[...], ln2b_ref[...])
    h = jnp.dot(h.astype(jnp.bfloat16), f1w_ref[...],
                preferred_element_type=jnp.float32) + f1b_ref[...]
    h = h * jax.nn.sigmoid(1.702 * h)               # quick_gelu, f32
    h = jnp.dot(h.astype(jnp.bfloat16), f2w_ref[...],
                preferred_element_type=jnp.float32) + f2b_ref[...]
    x = x + h

    x_sc[...] = x                                   # carry residual to the next layer

    if inter_ref is not None:
        @pl.when(layer == inter_layer)
        def _():
            iv = x
            if ln_intermediate:
                iv = _layernorm(iv, flnw_ref[...], flnb_ref[...])
            inter_ref[...] = iv

    @pl.when(layer == num_layers - 1)
    def _():
        out_ref[...] = _layernorm(x, flnw_ref[...], flnb_ref[...])


# ---------------------------------- pallas_call wrapper ------------------------------------
def clip_encoder(x_emb, packed, *, heads, intermediate_layer=None,
                 final_layer_norm_intermediate=True):
    B, T, D = x_emb.shape
    num_layers = packed["ln1_w"].shape[0]

    weight_names = ("ln1_w", "ln1_b", "qkv_w", "qkv_b", "o_w", "o_b",
                    "ln2_w", "ln2_b", "fc1_w", "fc1_b", "fc2_w", "fc2_b")
    weights = [packed[k] for k in weight_names]

    def layer_spec(arr):
        """Select layer `l` of a stacked weight and squeeze the layer axis."""
        zeros = (0,) * (arr.ndim - 1)
        return pl.BlockSpec((None,) + tuple(arr.shape[1:]),
                            lambda b, l, zeros=zeros: (l,) + zeros)

    in_specs = ([pl.BlockSpec((None, T, D), lambda b, l: (b, 0, 0))]
                + [layer_spec(w) for w in weights]
                + [pl.BlockSpec(packed["fln_w"].shape, lambda b, l: (0, 0)),
                   pl.BlockSpec(packed["fln_b"].shape, lambda b, l: (0, 0))])

    io_spec = pl.BlockSpec((None, T, D), lambda b, l: (b, 0, 0))
    if intermediate_layer is None:
        out_shape = jax.ShapeDtypeStruct((B, T, D), jnp.float32)
        out_specs = io_spec
    else:
        out_shape = (jax.ShapeDtypeStruct((B, T, D), jnp.float32),
                     jax.ShapeDtypeStruct((B, T, D), jnp.float32))
        out_specs = (io_spec, io_spec)

    kern = functools.partial(
        clip_layer_kernel,
        num_layers=num_layers, heads=heads,
        inter_layer=intermediate_layer,
        ln_intermediate=final_layer_norm_intermediate)

    return pl.pallas_call(
        kern,
        out_shape=out_shape,
        grid=(B, num_layers),                       # batch parallel, layers streamed
        in_specs=in_specs,
        out_specs=out_specs,
        scratch_shapes=[pltpu.VMEM((T, D), jnp.float32)],
        compiler_params=pltpu.CompilerParams(
            dimension_semantics=("parallel", "arbitrary"),
            vmem_limit_bytes=48 * 1024 * 1024),
    )(x_emb, *weights, packed["fln_w"], packed["fln_b"])


# ---------------------------------- parameter construction ---------------------------------
def init_params(key):
    """Parameters in PyTorch layout: Linear weights are (out_features, in_features)."""
    def normal(k, shape, std=0.02):
        return std * jax.random.normal(k, shape, dtype=jnp.float32)

    keys = jax.random.split(key, 2 + NUM_LAYERS)
    params = {
        "token_embedding": normal(keys[0], (VOCAB_SIZE, EMBED_DIM)),
        "position_embedding": normal(keys[1], (NUM_POSITIONS, EMBED_DIM)),
        "final_ln_w": jnp.ones((EMBED_DIM,), jnp.float32),
        "final_ln_b": jnp.zeros((EMBED_DIM,), jnp.float32),
        # self.text_projection.weight.copy_(torch.eye(embed_dim)), bias=False
        "text_projection": jnp.eye(EMBED_DIM, dtype=jnp.float32),
        "layers": [],
    }
    for li in range(NUM_LAYERS):
        lk = jax.random.split(keys[2 + li], 9)
        lp = {
            "ln1_w": jnp.ones((EMBED_DIM,), jnp.float32),
            "ln1_b": jnp.zeros((EMBED_DIM,), jnp.float32),
            "q_w": normal(lk[0], (EMBED_DIM, EMBED_DIM)), "q_b": normal(lk[1], (EMBED_DIM,)),
            "k_w": normal(lk[2], (EMBED_DIM, EMBED_DIM)), "k_b": normal(lk[3], (EMBED_DIM,)),
            "v_w": normal(lk[4], (EMBED_DIM, EMBED_DIM)), "v_b": normal(lk[5], (EMBED_DIM,)),
            "o_w": normal(lk[6], (EMBED_DIM, EMBED_DIM)),
            "o_b": jnp.zeros((EMBED_DIM,), jnp.float32),
            "ln2_w": jnp.ones((EMBED_DIM,), jnp.float32),
            "ln2_b": jnp.zeros((EMBED_DIM,), jnp.float32),
            "fc1_w": normal(lk[7], (INTERMEDIATE, EMBED_DIM)),
            "fc1_b": jnp.zeros((INTERMEDIATE,), jnp.float32),
            "fc2_w": normal(lk[8], (EMBED_DIM, INTERMEDIATE)),
            "fc2_b": jnp.zeros((EMBED_DIM,), jnp.float32),
        }
        params["layers"].append(lp)
    return params


def pack_params(params):
    """One-time host prep: expose heads in the weights, fold the softmax scale into q,
    transpose to (in, out), cast matmul weights to bf16, and stack layers."""
    layers = params["layers"]
    D, H = EMBED_DIM, HEADS
    hd = D // H
    scale = 1.0 / float(hd) ** 0.5
    bf16 = jnp.bfloat16

    def head_w(w):                    # torch (out, in) -> (H, in, hd)
        return jnp.transpose(w.T.reshape(D, H, hd), (1, 0, 2))

    def head_b(b):
        return b.reshape(H, hd)

    def stk(fn):
        return jnp.stack([fn(lp) for lp in layers], axis=0)

    packed = {
        "ln1_w": stk(lambda lp: lp["ln1_w"][None, :]),                       # (L, 1, D) f32
        "ln1_b": stk(lambda lp: lp["ln1_b"][None, :]),
        "qkv_w": stk(lambda lp: jnp.concatenate(
            [head_w(lp["q_w"]) * scale, head_w(lp["k_w"]), head_w(lp["v_w"])],
            axis=0)).astype(bf16),                                           # (L, 3H, D, hd)
        "qkv_b": stk(lambda lp: jnp.concatenate(
            [head_b(lp["q_b"]) * scale, head_b(lp["k_b"]), head_b(lp["v_b"])],
            axis=0)),                                                        # (L, 3H, hd) f32
        "o_w": stk(lambda lp: lp["o_w"].T.reshape(H, hd, D)).astype(bf16),   # (L, H, hd, D)
        "o_b": stk(lambda lp: lp["o_b"][None, :]),                           # (L, 1, D) f32
        "ln2_w": stk(lambda lp: lp["ln2_w"][None, :]),
        "ln2_b": stk(lambda lp: lp["ln2_b"][None, :]),
        "fc1_w": stk(lambda lp: lp["fc1_w"].T).astype(bf16),                 # (L, D, I)
        "fc1_b": stk(lambda lp: lp["fc1_b"][None, :]),                       # (L, 1, I) f32
        "fc2_w": stk(lambda lp: lp["fc2_w"].T).astype(bf16),                 # (L, I, D)
        "fc2_b": stk(lambda lp: lp["fc2_b"][None, :]),                       # (L, 1, D) f32
        "fln_w": params["final_ln_w"][None, :],                              # (1, D) f32
        "fln_b": params["final_ln_b"][None, :],
    }
    return packed


# --------------------------------------- forward pass --------------------------------------
def clip_text_model_forward(params, input_tokens, intermediate_output=None,
                            final_layer_norm_intermediate=True):
    packed = pack_params(params)                       # one-time weight prep (outside kernel)
    B, T = input_tokens.shape
    D = params["token_embedding"].shape[1]
    L = len(params["layers"])

    # CLIPEmbeddings: token_embedding(tokens) + position_embedding.weight (plain-JAX gather)
    x = params["token_embedding"][input_tokens] + params["position_embedding"][None, :, :]
    x = x.astype(jnp.float32)                          # (B, T, D)

    il = intermediate_output
    if il is not None and il < 0:
        il = L + il
    if il is not None and not (0 <= il < L):
        il = None

    res = clip_encoder(x, packed, heads=HEADS, intermediate_layer=il,
                       final_layer_norm_intermediate=final_layer_norm_intermediate)
    if il is None:
        out, inter = res, None
    else:
        out, inter = res

    # pooled_output = x[arange(B), argmax(tokens, -1)]   (EOS token has the highest id)
    idx = jnp.argmax(input_tokens.astype(jnp.int32), axis=-1)
    pooled = out[jnp.arange(B), idx]

    # CLIPTextModel: out = text_projection(pooled)   (weight == identity)
    projected = pooled @ params["text_projection"].T
    return out, inter, projected, pooled


# -------------------------------------------- main ------------------------------------------
if __name__ == "__main__":
    key = jax.random.PRNGKey(0)
    pkey, tkey = jax.random.split(key)
    params = init_params(pkey)

    input_tokens = jax.random.randint(tkey, (BATCH, NUM_POSITIONS), 0, VOCAB_SIZE,
                                      dtype=jnp.int32)

    x_out, intermediate, projected, pooled = clip_text_model_forward(params, input_tokens)
    jax.block_until_ready(x_out)
    jax.block_until_ready(projected)
    jax.block_until_ready(pooled)

    assert x_out.shape == (BATCH, NUM_POSITIONS, EMBED_DIM)
    assert projected.shape == (BATCH, EMBED_DIM)
    assert pooled.shape == (BATCH, EMBED_DIM)
    assert intermediate is None
    assert bool(jnp.all(jnp.isfinite(x_out)))
    print("KERNEL_OK")
</pallas_src>

<mosaic_0001>
module attributes {stable_mosaic.version = 11 : i64} {
  func.func @clip_layer_kernel(%arg0: i32, %arg1: i32, %arg2: memref<1x8x64xf32, #tpu.memory_space<vmem>>, %arg3: memref<1x1x64xf32, #tpu.memory_space<vmem>>, %arg4: memref<1x1x64xf32, #tpu.memory_space<vmem>>, %arg5: memref<1x12x64x16xbf16, #tpu.memory_space<vmem>>, %arg6: memref<1x12x16xf32, #tpu.memory_space<vmem>>, %arg7: memref<1x4x16x64xbf16, #tpu.memory_space<vmem>>, %arg8: memref<1x1x64xf32, #tpu.memory_space<vmem>>, %arg9: memref<1x1x64xf32, #tpu.memory_space<vmem>>, %arg10: memref<1x1x64xf32, #tpu.memory_space<vmem>>, %arg11: memref<1x64x128xbf16, #tpu.memory_space<vmem>>, %arg12: memref<1x1x128xf32, #tpu.memory_space<vmem>>, %arg13: memref<1x128x64xbf16, #tpu.memory_space<vmem>>, %arg14: memref<1x1x64xf32, #tpu.memory_space<vmem>>, %arg15: memref<1x64xf32, #tpu.memory_space<vmem>>, %arg16: memref<1x64xf32, #tpu.memory_space<vmem>>, %arg17: memref<1x8x64xf32, #tpu.memory_space<vmem>>, %arg18: memref<8x64xf32, #tpu.memory_space<vmem>>) attributes {dimension_semantics = [#tpu.dimension_semantics<parallel>, #tpu.dimension_semantics<arbitrary>], iteration_bounds = array<i64: 2, 2>, scalar_prefetch = 0 : i64, scratch_operands = 1 : i64, tpu.core_type = #tpu.core_type<tc>, window_params = [{transform_indices = @transform_0, window_bounds = array<i64: 1, 8, 64>}, {transform_indices = @transform_1, window_bounds = array<i64: 1, 1, 64>}, {transform_indices = @transform_2, window_bounds = array<i64: 1, 1, 64>}, {transform_indices = @transform_3, window_bounds = array<i64: 1, 12, 64, 16>}, {transform_indices = @transform_4, window_bounds = array<i64: 1, 12, 16>}, {transform_indices = @transform_5, window_bounds = array<i64: 1, 4, 16, 64>}, {transform_indices = @transform_6, window_bounds = array<i64: 1, 1, 64>}, {transform_indices = @transform_7, window_bounds = array<i64: 1, 1, 64>}, {transform_indices = @transform_8, window_bounds = array<i64: 1, 1, 64>}, {transform_indices = @transform_9, window_bounds = array<i64: 1, 64, 128>}, {transform_indices = @transform_10, window_bounds = array<i64: 1, 1, 128>}, {transform_indices = @transform_11, window_bounds = array<i64: 1, 128, 64>}, {transform_indices = @transform_12, window_bounds = array<i64: 1, 1, 64>}, {pipeline_mode = #tpu.pipeline_mode<synchronous>, transform_indices = @transform_13, window_bounds = array<i64: 1, 64>}, {pipeline_mode = #tpu.pipeline_mode<synchronous>, transform_indices = @transform_14, window_bounds = array<i64: 1, 64>}, {transform_indices = @transform_15, window_bounds = array<i64: 1, 8, 64>}]} {
    %c0_i32 = arith.constant 0 : i32
    %0 = arith.cmpi eq, %arg1, %c0_i32 : i32
    %1 = arith.extui %0 : i1 to i32
    %c0_i32_0 = arith.constant 0 : i32
    %2 = arith.cmpi ne, %1, %c0_i32_0 : i32
    scf.if %2 {
      %c0_64 = arith.constant 0 : index
      %c0_65 = arith.constant 0 : index
      %c0_66 = arith.constant 0 : index
      %145 = vector.load %arg2[%c0_64, %c0_65, %c0_66] : memref<1x8x64xf32, #tpu.memory_space<vmem>>, vector<1x8x64xf32>
      %146 = vector.shape_cast %145 : vector<1x8x64xf32> to vector<8x64xf32>
      %c0_67 = arith.constant 0 : index
      %c0_68 = arith.constant 0 : index
      %147 = vector.load %arg18[%c0_67, %c0_68] : memref<8x64xf32, #tpu.memory_space<vmem>>, vector<8x64xf32>
      tpu.vector_store %arg18[%c0_67, %c0_68], %146 {strides = array<i32>} : memref<8x64xf32, #tpu.memory_space<vmem>>, vector<8x64xf32>,
    } else {
    }
    %c0 = arith.constant 0 : index
    %c0_1 = arith.constant 0 : index
    %3 = vector.load %arg18[%c0, %c0_1] : memref<8x64xf32, #tpu.memory_space<vmem>>, vector<8x64xf32>
    %4 = tpu.iota {dimensions = array<i32: 0>} : vector<8x8xi32>
    %5 = tpu.iota {dimensions = array<i32: 1>} : vector<8x8xi32>
    %6 = arith.cmpi sgt, %5, %4 : vector<8x8xi32>
    %cst = arith.constant -1.000000e+09 : f32
    %cst_2 = arith.constant 0.000000e+00 : f32
    %7 = vector.broadcast %cst : f32 to vector<8x8xf32>
    %8 = vector.broadcast %cst_2 : f32 to vector<8x8xf32>
    %9 = arith.select %6, %7, %8 : vector<8x8xi1>, vector<8x8xf32>
    %10 = vector.shape_cast %9 : vector<8x8xf32> to vector<1x8x8xf32>
    %c0_3 = arith.constant 0 : index
    %c0_4 = arith.constant 0 : index
    %c0_5 = arith.constant 0 : index
    %11 = vector.load %arg3[%c0_3, %c0_4, %c0_5] : memref<1x1x64xf32, #tpu.memory_space<vmem>>, vector<1x1x64xf32>
    %12 = vector.shape_cast %11 : vector<1x1x64xf32> to vector<1x64xf32>
    %c0_6 = arith.constant 0 : index
    %c0_7 = arith.constant 0 : index
    %c0_8 = arith.constant 0 : index
    %13 = vector.load %arg4[%c0_6, %c0_7, %c0_8] : memref<1x1x64xf32, #tpu.memory_space<vmem>>, vector<1x1x64xf32>
    %14 = vector.shape_cast %13 : vector<1x1x64xf32> to vector<1x64xf32>
    %cst_9 = arith.constant dense<0.000000e+00> : vector<8xf32>
    %15 = vector.multi_reduction <add>, %3, %cst_9 [1] : vector<8x64xf32> to vector<8xf32>
    %16 = vector.shape_cast %15 : vector<8xf32> to vector<8x1xf32>
    %cst_10 = arith.constant 6.400000e+01 : f32
    %17 = vector.broadcast %cst_10 : f32 to vector<8x1xf32>
    %18 = arith.divf %16, %17 : vector<8x1xf32>
    %19 = vector.broadcast %18 : vector<8x1xf32> to vector<8x64xf32>
    %20 = arith.subf %3, %19 : vector<8x64xf32>
    %21 = arith.mulf %20, %20 : vector<8x64xf32>
    %cst_11 = arith.constant dense<0.000000e+00> : vector<8xf32>
    %22 = vector.multi_reduction <add>, %21, %cst_11 [1] : vector<8x64xf32> to vector<8xf32>
    %23 = vector.shape_cast %22 : vector<8xf32> to vector<8x1xf32>
    %cst_12 = arith.constant 6.400000e+01 : f32
    %24 = vector.broadcast %cst_12 : f32 to vector<8x1xf32>
    %25 = arith.divf %23, %24 : vector<8x1xf32>
    %26 = vector.broadcast %18 : vector<8x1xf32> to vector<8x64xf32>
    %27 = arith.subf %3, %26 : vector<8x64xf32>
    %cst_13 = arith.constant 9.99999974E-6 : f32
    %28 = vector.broadcast %cst_13 : f32 to vector<8x1xf32>
    %29 = arith.addf %25, %28 : vector<8x1xf32>
    %30 = math.rsqrt %29 : vector<8x1xf32>
    %31 = vector.broadcast %30 : vector<8x1xf32> to vector<8x64xf32>
    %32 = arith.mulf %27, %31 : vector<8x64xf32>
    %33 = vector.broadcast %12 : vector<1x64xf32> to vector<8x64xf32>
    %34 = arith.mulf %32, %33 : vector<8x64xf32>
    %35 = vector.broadcast %14 : vector<1x64xf32> to vector<8x64xf32>
    %36 = arith.addf %34, %35 : vector<8x64xf32>
    %37 = arith.truncf %36 : vector<8x64xf32> to vector<8x64xbf16>
    %38 = vector.shape_cast %37 : vector<8x64xbf16> to vector<1x8x64xbf16>
    %39 = vector.shape_cast %38 : vector<1x8x64xbf16> to vector<1x8x64xbf16>
    %40 = vector.broadcast %39 : vector<1x8x64xbf16> to vector<12x8x64xbf16>
    %c0_14 = arith.constant 0 : index
    %c0_15 = arith.constant 0 : index
    %c0_16 = arith.constant 0 : index
    %c0_17 = arith.constant 0 : index
    %41 = vector.load %arg5[%c0_14, %c0_15, %c0_16, %c0_17] : memref<1x12x64x16xbf16, #tpu.memory_space<vmem>>, vector<1x12x64x16xbf16>
    %42 = vector.shape_cast %41 : vector<1x12x64x16xbf16> to vector<12x64x16xbf16>
    "tpu.trace_start"() <{level = 10 : i32, message = "ntd,ndf->ntf"}> : () -> ()
    %cst_18 = arith.constant dense<0.000000e+00> : vector<12x8x16xf32>
    %43 = tpu.matmul %40, %42, %cst_18 {dimension_numbers = #tpu.dot_dimension_numbers<[2], [1], [1], [2], [0, 0, 0, 1, 1, 2], [0], [0]>} : vector<12x8x64xbf16>, vector<12x64x16xbf16>, vector<12x8x16xf32> -> vector<12x8x16xf32>
    "tpu.trace_stop"() : () -> ()
    %c0_19 = arith.constant 0 : index
    %c0_20 = arith.constant 0 : index
    %c0_21 = arith.constant 0 : index
    %44 = vector.load %arg6[%c0_19, %c0_20, %c0_21] : memref<1x12x16xf32, #tpu.memory_space<vmem>>, vector<1x12x16xf32>
    %45 = vector.shape_cast %44 : vector<1x12x16xf32> to vector<12x16xf32>
    %46 = vector.shape_cast %45 : vector<12x16xf32> to vector<12x1x16xf32>
    %47 = vector.broadcast %46 : vector<12x1x16xf32> to vector<12x8x16xf32>
    %48 = arith.addf %43, %47 : vector<12x8x16xf32>
    %49 = vector.extract_strided_slice %48 {offsets = [0, 0, 0], sizes = [4, 8, 16], strides = [1, 1, 1]} : vector<12x8x16xf32> to vector<4x8x16xf32>
    %50 = arith.truncf %49 : vector<4x8x16xf32> to vector<4x8x16xbf16>
    %51 = vector.extract_strided_slice %48 {offsets = [4, 0, 0], sizes = [4, 8, 16], strides = [1, 1, 1]} : vector<12x8x16xf32> to vector<4x8x16xf32>
    %52 = arith.truncf %51 : vector<4x8x16xf32> to vector<4x8x16xbf16>
    %53 = vector.extract_strided_slice %48 {offsets = [8, 0, 0], sizes = [4, 8, 16], strides = [1, 1, 1]} : vector<12x8x16xf32> to vector<4x8x16xf32>
    %54 = arith.truncf %53 : vector<4x8x16xf32> to vector<4x8x16xbf16>
    "tpu.trace_start"() <{level = 10 : i32, message = "htf,hsf->hts"}> : () -> ()
    %cst_22 = arith.constant dense<0.000000e+00> : vector<4x8x8xf32>
    %55 = tpu.matmul %50, %52, %cst_22 {dimension_numbers = #tpu.dot_dimension_numbers<[2], [2], [1], [1], [0, 0, 0, 1, 1, 1], [0], [0]>} : vector<4x8x16xbf16>, vector<4x8x16xbf16>, vector<4x8x8xf32> -> vector<4x8x8xf32>
    "tpu.trace_stop"() : () -> ()
    %56 = vector.broadcast %10 : vector<1x8x8xf32> to vector<4x8x8xf32>
    %57 = arith.addf %55, %56 : vector<4x8x8xf32>
    %cst_23 = arith.constant dense<0xFF800000> : vector<4x8xf32>
    %58 = vector.multi_reduction <maximumf>, %57, %cst_23 [2] : vector<4x8x8xf32> to vector<4x8xf32>
    %59 = vector.shape_cast %58 : vector<4x8xf32> to vector<4x8x1xf32>
    %60 = vector.broadcast %59 : vector<4x8x1xf32> to vector<4x8x8xf32>
    %61 = arith.subf %57, %60 : vector<4x8x8xf32>
    %62 = math.exp %61 : vector<4x8x8xf32>
    %cst_24 = arith.constant dense<0.000000e+00> : vector<4x8xf32>
    %63 = vector.multi_reduction <add>, %62, %cst_24 [2] : vector<4x8x8xf32> to vector<4x8xf32>
    %64 = vector.shape_cast %63 : vector<4x8xf32> to vector<4x8x1xf32>
    %65 = tpu.reciprocal %64 {approx = true} : vector<4x8x1xf32> -> vector<4x8x1xf32>
    %66 = vector.broadcast %65 : vector<4x8x1xf32> to vector<4x8x8xf32>
    %67 = arith.mulf %62, %66 : vector<4x8x8xf32>
    %68 = arith.truncf %67 : vector<4x8x8xf32> to vector<4x8x8xbf16>
    "tpu.trace_start"() <{level = 10 : i32, message = "hts,hsf->htf"}> : () -> ()
    %cst_25 = arith.constant dense<0.000000e+00> : vector<4x8x16xf32>
    %69 = tpu.matmul %68, %54, %cst_25 {dimension_numbers = #tpu.dot_dimension_numbers<[2], [1], [1], [2], [0, 0, 0, 1, 1, 2], [0], [0]>} : vector<4x8x8xbf16>, vector<4x8x16xbf16>, vector<4x8x16xf32> -> vector<4x8x16xf32>
    "tpu.trace_stop"() : () -> ()
    %70 = arith.truncf %69 : vector<4x8x16xf32> to vector<4x8x16xbf16>
    %c0_26 = arith.constant 0 : index
    %c0_27 = arith.constant 0 : index
    %c0_28 = arith.constant 0 : index
    %c0_29 = arith.constant 0 : index
    %71 = vector.load %arg7[%c0_26, %c0_27, %c0_28, %c0_29] : memref<1x4x16x64xbf16, #tpu.memory_space<vmem>>, vector<1x4x16x64xbf16>
    %72 = vector.shape_cast %71 : vector<1x4x16x64xbf16> to vector<4x16x64xbf16>
    "tpu.trace_start"() <{level = 10 : i32, message = "htf,hfd->htd"}> : () -> ()
    %cst_30 = arith.constant dense<0.000000e+00> : vector<4x8x64xf32>
    %73 = tpu.matmul %70, %72, %cst_30 {dimension_numbers = #tpu.dot_dimension_numbers<[2], [1], [1], [2], [0, 0, 0, 1, 1, 2], [0], [0]>} : vector<4x8x16xbf16>, vector<4x16x64xbf16>, vector<4x8x64xf32> -> vector<4x8x64xf32>
    "tpu.trace_stop"() : () -> ()
    %74 = vector.extract_strided_slice %73 {offsets = [0, 0, 0], sizes = [1, 8, 64], strides = [1, 1, 1]} : vector<4x8x64xf32> to vector<1x8x64xf32>
    %75 = vector.shape_cast %74 : vector<1x8x64xf32> to vector<8x64xf32>
    %76 = vector.extract_strided_slice %73 {offsets = [1, 0, 0], sizes = [1, 8, 64], strides = [1, 1, 1]} : vector<4x8x64xf32> to vector<1x8x64xf32>
    %77 = vector.shape_cast %76 : vector<1x8x64xf32> to vector<8x64xf32>
    %78 = arith.addf %75, %77 : vector<8x64xf32>
    %79 = vector.extract_strided_slice %73 {offsets = [2, 0, 0], sizes = [1, 8, 64], strides = [1, 1, 1]} : vector<4x8x64xf32> to vector<1x8x64xf32>
    %80 = vector.shape_cast %79 : vector<1x8x64xf32> to vector<8x64xf32>
    %81 = arith.addf %78, %80 : vector<8x64xf32>
    %82 = vector.extract_strided_slice %73 {offsets = [3, 0, 0], sizes = [1, 8, 64], strides = [1, 1, 1]} : vector<4x8x64xf32> to vector<1x8x64xf32>
    %83 = vector.shape_cast %82 : vector<1x8x64xf32> to vector<8x64xf32>
    %84 = arith.addf %81, %83 : vector<8x64xf32>
    %c0_31 = arith.constant 0 : index
    %c0_32 = arith.constant 0 : index
    %c0_33 = arith.constant 0 : index
    %85 = vector.load %arg8[%c0_31, %c0_32, %c0_33] : memref<1x1x64xf32, #tpu.memory_space<vmem>>, vector<1x1x64xf32>
    %86 = vector.shape_cast %85 : vector<1x1x64xf32> to vector<1x64xf32>
    %87 = vector.broadcast %86 : vector<1x64xf32> to vector<8x64xf32>
    %88 = arith.addf %84, %87 : vector<8x64xf32>
    %89 = arith.addf %3, %88 : vector<8x64xf32>
    %c0_34 = arith.constant 0 : index
    %c0_35 = arith.constant 0 : index
    %c0_36 = arith.constant 0 : index
    %90 = vector.load %arg9[%c0_34, %c0_35, %c0_36] : memref<1x1x64xf32, #tpu.memory_space<vmem>>, vector<1x1x64xf32>
    %91 = vector.shape_cast %90 : vector<1x1x64xf32> to vector<1x64xf32>
    %c0_37 = arith.constant 0 : index
    %c0_38 = arith.constant 0 : index
    %c0_39 = arith.constant 0 : index
    %92 = vector.load %arg10[%c0_37, %c0_38, %c0_39] : memref<1x1x64xf32, #tpu.memory_space<vmem>>, vector<1x1x64xf32>
    %93 = vector.shape_cast %92 : vector<1x1x64xf32> to vector<1x64xf32>
    %cst_40 = arith.constant dense<0.000000e+00> : vector<8xf32>
    %94 = vector.multi_reduction <add>, %89, %cst_40 [1] : vector<8x64xf32> to vector<8xf32>
    %95 = vector.shape_cast %94 : vector<8xf32> to vector<8x1xf32>
    %cst_41 = arith.constant 6.400000e+01 : f32
    %96 = vector.broadcast %cst_41 : f32 to vector<8x1xf32>
    %97 = arith.divf %95, %96 : vector<8x1xf32>
    %98 = vector.broadcast %97 : vector<8x1xf32> to vector<8x64xf32>
    %99 = arith.subf %89, %98 : vector<8x64xf32>
    %100 = arith.mulf %99, %99 : vector<8x64xf32>
    %cst_42 = arith.constant dense<0.000000e+00> : vector<8xf32>
    %101 = vector.multi_reduction <add>, %100, %cst_42 [1] : vector<8x64xf32> to vector<8xf32>
    %102 = vector.shape_cast %101 : vector<8xf32> to vector<8x1xf32>
    %cst_43 = arith.constant 6.400000e+01 : f32
    %103 = vector.broadcast %cst_43 : f32 to vector<8x1xf32>
    %104 = arith.divf %102, %103 : vector<8x1xf32>
    %105 = vector.broadcast %97 : vector<8x1xf32> to vector<8x64xf32>
    %106 = arith.subf %89, %105 : vector<8x64xf32>
    %cst_44 = arith.constant 9.99999974E-6 : f32
    %107 = vector.broadcast %cst_44 : f32 to vector<8x1xf32>
    %108 = arith.addf %104, %107 : vector<8x1xf32>
    %109 = math.rsqrt %108 : vector<8x1xf32>
    %110 = vector.broadcast %109 : vector<8x1xf32> to vector<8x64xf32>
    %111 = arith.mulf %106, %110 : vector<8x64xf32>
    %112 = vector.broadcast %91 : vector<1x64xf32> to vector<8x64xf32>
    %113 = arith.mulf %111, %112 : vector<8x64xf32>
    %114 = vector.broadcast %93 : vector<1x64xf32> to vector<8x64xf32>
    %115 = arith.addf %113, %114 : vector<8x64xf32>
    %116 = arith.truncf %115 : vector<8x64xf32> to vector<8x64xbf16>
    %c0_45 = arith.constant 0 : index
    %c0_46 = arith.constant 0 : index
    %c0_47 = arith.constant 0 : index
    %117 = vector.load %arg11[%c0_45, %c0_46, %c0_47] : memref<1x64x128xbf16, #tpu.memory_space<vmem>>, vector<1x64x128xbf16>
    %118 = vector.shape_cast %117 : vector<1x64x128xbf16> to vector<64x128xbf16>
    %cst_48 = arith.constant dense<0.000000e+00> : vector<8x128xf32>
    %119 = tpu.matmul %116, %118, %cst_48 {dimension_numbers = #tpu.dot_dimension_numbers<[1], [0], [0], [1], [0, 0, 1, 1], [], []>} : vector<8x64xbf16>, vector<64x128xbf16>, vector<8x128xf32> -> vector<8x128xf32>
    %c0_49 = arith.constant 0 : index
    %c0_50 = arith.constant 0 : index
    %c0_51 = arith.constant 0 : index
    %120 = vector.load %arg12[%c0_49, %c0_50, %c0_51] : memref<1x1x128xf32, #tpu.memory_space<vmem>>, vector<1x1x128xf32>
    %121 = vector.shape_cast %120 : vector<1x1x128xf32> to vector<1x128xf32>
    %122 = vector.broadcast %121 : vector<1x128xf32> to vector<8x128xf32>
    %123 = arith.addf %119, %122 : vector<8x128xf32>
    %cst_52 = arith.constant 1.702000e+00 : f32
    %124 = vector.broadcast %cst_52 : f32 to vector<8x128xf32>
    %125 = arith.mulf %124, %123 : vector<8x128xf32>
    %126 = arith.negf %125 : vector<8x128xf32>
    %127 = math.exp %126 : vector<8x128xf32>
    %cst_53 = arith.constant 1.000000e+00 : f32
    %128 = vector.broadcast %cst_53 : f32 to vector<8x128xf32>
    %129 = arith.addf %128, %127 : vector<8x128xf32>
    %130 = arith.divf %128, %129 : vector<8x128xf32>
    %131 = arith.mulf %123, %130 : vector<8x128xf32>
    %132 = arith.truncf %131 : vector<8x128xf32> to vector<8x128xbf16>
    %c0_54 = arith.constant 0 : index
    %c0_55 = arith.constant 0 : index
    %c0_56 = arith.constant 0 : index
    %133 = vector.load %arg13[%c0_54, %c0_55, %c0_56] : memref<1x128x64xbf16, #tpu.memory_space<vmem>>, vector<1x128x64xbf16>
    %134 = vector.shape_cast %133 : vector<1x128x64xbf16> to vector<128x64xbf16>
    %cst_57 = arith.constant dense<0.000000e+00> : vector<8x64xf32>
    %135 = tpu.matmul %132, %134, %cst_57 {dimension_numbers = #tpu.dot_dimension_numbers<[1], [0], [0], [1], [0, 0, 1, 1], [], []>} : vector<8x128xbf16>, vector<128x64xbf16>, vector<8x64xf32> -> vector<8x64xf32>
    %c0_58 = arith.constant 0 : index
    %c0_59 = arith.constant 0 : index
    %c0_60 = arith.constant 0 : index
    %136 = vector.load %arg14[%c0_58, %c0_59, %c0_60] : memref<1x1x64xf32, #tpu.memory_space<vmem>>, vector<1x1x64xf32>
    %137 = vector.shape_cast %136 : vector<1x1x64xf32> to vector<1x64xf32>
    %138 = vector.broadcast %137 : vector<1x64xf32> to vector<8x64xf32>
    %139 = arith.addf %135, %138 : vector<8x64xf32>
    %140 = arith.addf %89, %139 : vector<8x64xf32>
    %c0_61 = arith.constant 0 : index
    %c0_62 = arith.constant 0 : index
    %141 = vector.load %arg18[%c0_61, %c0_62] : memref<8x64xf32, #tpu.memory_space<vmem>>, vector<8x64xf32>
    tpu.vector_store %arg18[%c0_61, %c0_62], %140 {strides = array<i32>} : memref<8x64xf32, #tpu.memory_space<vmem>>, vector<8x64xf32>,
    %c1_i32 = arith.constant 1 : i32
    %142 = arith.cmpi eq, %arg1, %c1_i32 : i32
    %143 = arith.extui %142 : i1 to i32
    %c0_i32_63 = arith.constant 0 : i32
    %144 = arith.cmpi ne, %143, %c0_i32_63 : i32
    scf.if %144 {
      %c0_64 = arith.constant 0 : index
      %c0_65 = arith.constant 0 : index
      %145 = vector.load %arg15[%c0_64, %c0_65] : memref<1x64xf32, #tpu.memory_space<vmem>>, vector<1x64xf32>
      %c0_66 = arith.constant 0 : index
      %c0_67 = arith.constant 0 : index
      %146 = vector.load %arg16[%c0_66, %c0_67] : memref<1x64xf32, #tpu.memory_space<vmem>>, vector<1x64xf32>
      %cst_68 = arith.constant dense<0.000000e+00> : vector<8xf32>
      %147 = vector.multi_reduction <add>, %140, %cst_68 [1] : vector<8x64xf32> to vector<8xf32>
      %148 = vector.shape_cast %147 : vector<8xf32> to vector<8x1xf32>
      %cst_69 = arith.constant 6.400000e+01 : f32
      %149 = vector.broadcast %cst_69 : f32 to vector<8x1xf32>
      %150 = arith.divf %148, %149 : vector<8x1xf32>
      %151 = vector.broadcast %150 : vector<8x1xf32> to vector<8x64xf32>
      %152 = arith.subf %140, %151 : vector<8x64xf32>
      %153 = arith.mulf %152, %152 : vector<8x64xf32>
      %cst_70 = arith.constant dense<0.000000e+00> : vector<8xf32>
      %154 = vector.multi_reduction <add>, %153, %cst_70 [1] : vector<8x64xf32> to vector<8xf32>
      %155 = vector.shape_cast %154 : vector<8xf32> to vector<8x1xf32>
      %cst_71 = arith.constant 6.400000e+01 : f32
      %156 = vector.broadcast %cst_71 : f32 to vector<8x1xf32>
      %157 = arith.divf %155, %156 : vector<8x1xf32>
      %158 = vector.broadcast %150 : vector<8x1xf32> to vector<8x64xf32>
      %159 = arith.subf %140, %158 : vector<8x64xf32>
      %cst_72 = arith.constant 9.99999974E-6 : f32
      %160 = vector.broadcast %cst_72 : f32 to vector<8x1xf32>
      %161 = arith.addf %157, %160 : vector<8x1xf32>
      %162 = math.rsqrt %161 : vector<8x1xf32>
      %163 = vector.broadcast %162 : vector<8x1xf32> to vector<8x64xf32>
      %164 = arith.mulf %159, %163 : vector<8x64xf32>
      %165 = vector.broadcast %145 : vector<1x64xf32> to vector<8x64xf32>
      %166 = arith.mulf %164, %165 : vector<8x64xf32>
      %167 = vector.broadcast %146 : vector<1x64xf32> to vector<8x64xf32>
      %168 = arith.addf %166, %167 : vector<8x64xf32>
      %c0_73 = arith.constant 0 : index
      %c0_74 = arith.constant 0 : index
      %c0_75 = arith.constant 0 : index
      %169 = vector.load %arg17[%c0_73, %c0_74, %c0_75] : memref<1x8x64xf32, #tpu.memory_space<vmem>>, vector<1x8x64xf32>
      %170 = vector.shape_cast %169 : vector<1x8x64xf32> to vector<8x64xf32>
      %171 = vector.shape_cast %168 : vector<8x64xf32> to vector<1x8x64xf32>
      tpu.vector_store %arg17[%c0_73, %c0_74, %c0_75], %171 {strides = array<i32>} : memref<1x8x64xf32, #tpu.memory_space<vmem>>, vector<1x8x64xf32>,
    } else {
    }
    return
  }
  func.func @transform_0(%arg0: i32, %arg1: i32) -> (i32, i32, i32) {
    %c0_i32 = arith.constant 0 : i32
    %c0_i32_0 = arith.constant 0 : i32
    %c0_i32_1 = arith.constant 0 : i32
    return %arg0, %c0_i32, %c0_i32_0 : i32, i32, i32
  }
  func.func @transform_1(%arg0: i32, %arg1: i32) -> (i32, i32, i32) {
    %c0_i32 = arith.constant 0 : i32
    %c0_i32_0 = arith.constant 0 : i32
    %c0_i32_1 = arith.constant 0 : i32
    return %arg1, %c0_i32, %c0_i32_0 : i32, i32, i32
  }
  func.func @transform_2(%arg0: i32, %arg1: i32) -> (i32, i32, i32) {
    %c0_i32 = arith.constant 0 : i32
    %c0_i32_0 = arith.constant 0 : i32
    %c0_i32_1 = arith.constant 0 : i32
    return %arg1, %c0_i32, %c0_i32_0 : i32, i32, i32
  }
  func.func @transform_3(%arg0: i32, %arg1: i32) -> (i32, i32, i32, i32) {
    %c0_i32 = arith.constant 0 : i32
    %c0_i32_0 = arith.constant 0 : i32
    %c0_i32_1 = arith.constant 0 : i32
    %c0_i32_2 = arith.constant 0 : i32
    return %arg1, %c0_i32, %c0_i32_0, %c0_i32_1 : i32, i32, i32, i32
  }
  func.func @transform_4(%arg0: i32, %arg1: i32) -> (i32, i32, i32) {
    %c0_i32 = arith.constant 0 : i32
    %c0_i32_0 = arith.constant 0 : i32
    %c0_i32_1 = arith.constant 0 : i32
    return %arg1, %c0_i32, %c0_i32_0 : i32, i32, i32
  }
  func.func @transform_5(%arg0: i32, %arg1: i32) -> (i32, i32, i32, i32) {
    %c0_i32 = arith.constant 0 : i32
    %c0_i32_0 = arith.constant 0 : i32
    %c0_i32_1 = arith.constant 0 : i32
    %c0_i32_2 = arith.constant 0 : i32
    return %arg1, %c0_i32, %c0_i32_0, %c0_i32_1 : i32, i32, i32, i32
  }
  func.func @transform_6(%arg0: i32, %arg1: i32) -> (i32, i32, i32) {
    %c0_i32 = arith.constant 0 : i32
    %c0_i32_0 = arith.constant 0 : i32
    %c0_i32_1 = arith.constant 0 : i32
    return %arg1, %c0_i32, %c0_i32_0 : i32, i32, i32
  }
  func.func @transform_7(%arg0: i32, %arg1: i32) -> (i32, i32, i32) {
    %c0_i32 = arith.constant 0 : i32
    %c0_i32_0 = arith.constant 0 : i32
    %c0_i32_1 = arith.constant 0 : i32
    return %arg1, %c0_i32, %c0_i32_0 : i32, i32, i32
  }
  func.func @transform_8(%arg0: i32, %arg1: i32) -> (i32, i32, i32) {
    %c0_i32 = arith.constant 0 : i32
    %c0_i32_0 = arith.constant 0 : i32
    %c0_i32_1 = arith.constant 0 : i32
    return %arg1, %c0_i32, %c0_i32_0 : i32, i32, i32
  }
  func.func @transform_9(%arg0: i32, %arg1: i32) -> (i32, i32, i32) {
    %c0_i32 = arith.constant 0 : i32
    %c0_i32_0 = arith.constant 0 : i32
    %c0_i32_1 = arith.constant 0 : i32
    return %arg1, %c0_i32, %c0_i32_0 : i32, i32, i32
  }
  func.func @transform_10(%arg0: i32, %arg1: i32) -> (i32, i32, i32) {
    %c0_i32 = arith.constant 0 : i32
    %c0_i32_0 = arith.constant 0 : i32
    %c0_i32_1 = arith.constant 0 : i32
    return %arg1, %c0_i32, %c0_i32_0 : i32, i32, i32
  }
  func.func @transform_11(%arg0: i32, %arg1: i32) -> (i32, i32, i32) {
    %c0_i32 = arith.constant 0 : i32
    %c0_i32_0 = arith.constant 0 : i32
    %c0_i32_1 = arith.constant 0 : i32
    return %arg1, %c0_i32, %c0_i32_0 : i32, i32, i32
  }
  func.func @transform_12(%arg0: i32, %arg1: i32) -> (i32, i32, i32) {
    %c0_i32 = arith.constant 0 : i32
    %c0_i32_0 = arith.constant 0 : i32
    %c0_i32_1 = arith.constant 0 : i32
    return %arg1, %c0_i32, %c0_i32_0 : i32, i32, i32
  }
  func.func @transform_13(%arg0: i32, %arg1: i32) -> (i32, i32) {
    %c0_i32 = arith.constant 0 : i32
    %c0_i32_0 = arith.constant 0 : i32
    %c0_i32_1 = arith.constant 0 : i32
    return %c0_i32, %c0_i32_0 : i32, i32
  }
  func.func @transform_14(%arg0: i32, %arg1: i32) -> (i32, i32) {
    %c0_i32 = arith.constant 0 : i32
    %c0_i32_0 = arith.constant 0 : i32
    %c0_i32_1 = arith.constant 0 : i32
    return %c0_i32, %c0_i32_0 : i32, i32
  }
  func.func @transform_15(%arg0: i32, %arg1: i32) -> (i32, i32, i32) {
    %c0_i32 = arith.constant 0 : i32
    %c0_i32_0 = arith.constant 0 : i32
    %c0_i32_1 = arith.constant 0 : i32
    return %arg0, %c0_i32, %c0_i32_0 : i32, i32, i32
  }
}

</mosaic_0001>

<bundles_post_ra>
// kernel: tpu_custom_call.1
= control target key start
LH: loop header
LB: loop body
LE: loop exit
PB: predicated region body
PF: predicated region fallthrough
CT: control target
= control target key end

     0   :  { %s4242_s0 = inlined_call_operand.vmem [shape: f32[2,8,64], index: 0, kind: input, shape index: {}]   ;;  %s4243_s1 = inlined_call_operand.vmem [shape: f32[2,1,64], index: 1, kind: input, shape index: {}]   ;;  %s4244_s2 = inlined_call_operand.vmem [shape: f32[2,1,64], index: 2, kind: input, shape index: {}]   ;;  %s4245_s3 = inlined_call_operand.vmem [shape: bf16[2,12,64,16], index: 3, kind: input, shape index: {}]   ;;  %s4246_s4 = inlined_call_operand.vmem [shape: f32[2,12,16], index: 4, kind: input, shape index: {}]   ;;  %s4247_s5 = inlined_call_operand.vmem [shape: bf16[2,4,16,64], index: 5, kind: input, shape index: {}]   ;;  %s4248_s6 = inlined_call_operand.vmem [shape: f32[2,1,64], index: 6, kind: input, shape index: {}]   ;;  %s4249_s7 = inlined_call_operand.vmem [shape: f32[2,1,64], index: 7, kind: input, shape index: {}]   ;;  %s4250_s8 = inlined_call_operand.vmem [shape: f32[2,1,64], index: 8, kind: input, shape index: {}]   ;;  %s4251_s9 = inlined_call_operand.vmem [shape: bf16[2,64,128], index: 9, kind: input, shape index: {}]   ;;  %s4252_s10 = inlined_call_operand.vmem [shape: f32[2,1,128], index: 10, kind: input, shape index: {}]   ;;  %s4253_s11 = inlined_call_operand.vmem [shape: bf16[2,128,64], index: 11, kind: input, shape index: {}]   ;;  %s4254_s12 = inlined_call_operand.vmem [shape: f32[2,1,64], index: 12, kind: input, shape index: {}]   ;;  %s4255_s13 = inlined_call_operand.vmem [shape: f32[1,64], index: 13, kind: input, shape index: {}]   ;;  %s4256_s14 = inlined_call_operand.vmem [shape: f32[1,64], index: 14, kind: input, shape index: {}]   ;;  %s4257_s15 = inlined_call_operand.hbm [shape: f32[2,8,64], index: 15, kind: output, shape index: {}]  }
   0x1   :  { %4273 = sst [smem:[#allocation19_spill]] %s4242_s0 }
   0x2   :  { %4274 = sst [smem:[#allocation20_spill]] %s4244_s2 }
   0x3   :  { %4275 = sst [smem:[#allocation21_spill]] %s4245_s3 }
   0x4   :  { %4276 = sst [smem:[#allocation22_spill]] %s4246_s4 }
   0x5   :  { %4277 = sst [smem:[#allocation23_spill]] %s4247_s5 }
   0x6   :  { %4278 = sst [smem:[#allocation24_spill]] %s4255_s13 }
   0x7   :  { %4279 = sst [smem:[#allocation25_spill]] %s4256_s14 }
   0x8   :  { %4280 = sst [smem:[#allocation26_spill]] %s4257_s15 }
   0x9   :  { %20 = vsyncpa [#allocation4], 0 }
   0xa   :  { %22 = vsyncpa [#allocation4 + $0x1], 0  ;;  %s3696_s18 = smov 0   ;;  %s3698_s19 = smov 0  }
   0xb   :  { %s3700_s20 = smov 0   ;;  %s3702_s21 = smov 0  }
   0xc   :  { %s3704_s22 = smov 0   ;;  %s3706_s23 = smov 0  }
   0xd   :  { %s3708_s24 = smov 0   ;;  %s3710_s25 = smov 0  }
   0xe LB: > { %4281 = sst [smem:[#allocation6_spill]] %s3582_s18  ;;  %s2877_s26 = sadd.s32 4294967295, %s3610_s25   ;;  %s3610_s25 = sphi %s3710_s25, %s28_s25   ;;  %s3606_s24 = sphi %s3708_s24, %s4325_s24   ;;  %s3602_s23 = sphi %s3706_s23, %s4324_s23   ;;  %s3598_s22 = sphi %s3704_s22, %s4323_s22   ;;  %s3594_s21 = sphi %s3702_s21, %s4322_s21   ;;  %s3590_s20 = sphi %s3700_s20, %s4321_s20   ;;  %s3586_s19 = sphi %s3698_s19, %s4320_s19   ;;  %s3582_s18 = sphi %s3696_s18, %s4319_s18  }
   0xf   : > { %4282 = sst [smem:[#allocation7_spill]] %s3586_s19  ;;  %s2878_s27 = sadd.s32 4294967294, %s3610_s25  }
  0x10   : > { %4283 = sst [smem:[#allocation8_spill]] %s3590_s20  ;;  %s37_s28 = sadd.s32 1, %s3602_s23 }
  0x11   : > { %4284 = sst [smem:[#allocation9_spill]] %s3594_s21  ;;  %p38_p0 = scmp.ge.s32.totalorder %s37_s28, 2 }
  0x12   : > { %4285 = sst [smem:[#allocation10_spill]] %s3598_s22  ;;  %s40_s29 = sadd.s32 1, %s3606_s24 }
  0x13   : > { %4286 = sst [smem:[#allocation11_spill]] %s3602_s23  ;;  %p437_p1 = scmp.ne.s32.totalorder %s3590_s20, %s3586_s19 }
  0x14   : > { %4287 = sst [smem:[#allocation12_spill]] %s3606_s24  ;;  %p438_p2 = scmp.eq.s32.totalorder %s2877_s26, 3 }
  0x15   : > { %4288 = sst [smem:[#allocation13_spill]] %s3610_s25  ;;  %s4327_s28 = smov (%p38_p0, %s37_s28), 0 }
  0x16   : > { %4289 = sst [smem:[#allocation14_spill]] %s4327_s28  ;;  %s4329_s29 = smov (!%p38_p0, %s40_s29), %s3606_s24 }
  0x17   : > { %p3745_p3 = por %p438_p2, %p437_p1  ;;  %p443_p4 = scmp.ne.s32.totalorder %s3586_s19, %s3582_s18 }
  0x18   : > { %p42_p5 = scmp.ge.s32.totalorder %s4329_s29, 2  ;;  %p444_p6 = scmp.eq.s32.totalorder %s2878_s27, 3 }
  0x19   : > { %s4290_s30 = scalar_select %p3745_p3, 1, 0 }
  0x1a   : > { %p2881_p7 = scmp.ge.s32.totalorder %s3610_s25, 1  ;;  %p557_p8 = scmp.lt.s32.totalorder %s3610_s25, 5 }
  0x1b   : > { %4291 = sst [smem:[#allocation15_spill]] %s4290_s30  ;;  %s4331_s29 = smov (%p42_p5, %s4329_s29), 0 }
  0x1c   : > { %4292 = sst [smem:[#allocation16_spill]] %s4331_s29  ;;  %p3755_p9 = por %p444_p6, %p443_p4 }
  0x1d   : > { %p558_p10 = pnand %p2881_p7, %p557_p8  ;;  %s424_s17 = ssub.s32 %s3606_s24, %s4331_s29 }
  0x1e   : > { %s4293_s16 = scalar_select %p3755_p9, 1, 0 }
  0x1f   : > { %s427_s26 = sadd.s32 1, %s3590_s20  ;;  %p425_p11 = scmp.eq.s32.totalorder %s424_s17, 0 }
  0x20   : > { %4294 = sst [smem:[#allocation17_spill]] %s4293_s16  ;;  %561 = sbr.rel (%p558_p10) target bundleno = 2728 (0xaa8), region = 80 }
  0x21   : > { %s3763_s28 = scalar_select %p425_p11, %s3590_s20, %s427_s26  }
  0x22   : > { %s4262_s27 = sand.u32 (!%p558_p10), 1, %s3586_s19   ;;  %p650_p12 = scmp.lt.s32.totalorder (!%p558_p10), %s3598_s22, 1 }
  0x23   : > { %4295 = sst [smem:[#allocation18_spill]] %s3763_s28  ;;  %s3769_s23 = sshll.u32 (!%p558_p10), %s4262_s27, 3 }
  0x24   : > { %p654_p13 = scmp.lt.s32.totalorder (!%p558_p10), %s3594_s21, 1  ;;  %s4296_s0 = sld [smem:[#allocation19_spill]] (!%p558_p10) }
  0x25   : > { %s4298_s3 = sld [smem:[#allocation21_spill]] (!%p558_p10)  ;;  %s4299_s4 = sld [smem:[#allocation22_spill]] (!%p558_p10) }
  0x26   : > { %s4300_s5 = sld [smem:[#allocation23_spill]] (!%p558_p10) }
  0x27   : > { %s651_s16 = scalar_select %p650_p12, %s3598_s22, 1 }
  0x28   : > { %s3774_s18 = scalar_select %p654_p13, %s3594_s21, 1 }
  0x29   : > { %s2883_s17 = sshll.u32 %s651_s16, 3  ;;  %s4301_s21 = sld [smem:[#allocation9_spill]] }
  0x2a   : > { %s653_s27 = scalar_lea.vmem %s4296_s0, %s2883_s17  ;;  %s3349_s19 = smul.u32 384, %s3774_s18 }
  0x2b   : > { %s2999_s22 = sshll.u32 %s3774_s18, 4  ;;  %s3000_s14 = sshll.u32 %s3774_s18, 5 }
  0x2c   : > { %s3793_s16 = scalar_lea.vmem %s4298_s3, %s3349_s19  ;;  %s3798_s17 = scalar_lea.vmem %s4299_s4, %s2999_s22 }
  0x2d   : > { %s3803_s20 = scalar_lea.vmem %s4300_s5, %s3000_s14  ;;  %s683_s3 = scalar_lea.vmem %s4250_s8, %s3774_s18 }
  0x2e   : > { %s3820_s26 = scalar_lea.vmem %s4251_s9, %s3000_s14  ;;  %s691_s4 = scalar_lea.vmem %s4252_s10, %s3774_s18 }
  0x2f   : > { %s3002_s5 = sshll.u32 %s3774_s18, 6  ;;  %s699_s30 = scalar_lea.vmem %s4254_s12, %s3774_s18 }
  0x30   : > { %s3834_s13 = scalar_lea.vmem %s4253_s11, %s3002_s5  ;;  %s649_s19 = scalar_lea.vmem [#allocation3], %s3769_s23 }
  0x31   : > { %p2893_p0 = scmp.ne.s32.totalorder %s4301_s21, 0 }
  0x32   : > { %v705_v0 = vld [vmem:[%s653_s27] sm:$0xff] (!%p2893_p0)  ;;  %vm706_vm0 = vcmask (!%p2893_p0), 523264  }
  0x33   : > { %704 = sbr.rel (%p2893_p0) target bundleno = 58 (0x3a), region = 84  ;;  %707 = vst.msk [vmem:[#allocation2] sm:$0xff] (!%p2893_p0), %vm706_vm0, %v705_v0 }
  0x3a PF: > { %v708_v1 = vld [vmem:[#allocation2] sm:$0xff]  ;;  %vm717_vm1 = vcmask 523264   ;;  %v3612_v10 = vmov 0.0   ;;  %v3426_v11 = vld [vmem:[%s3793_s16 + $0x8] sm:$0xff]   ;;  %v3428_v13 = vld [vmem:[%s3793_s16 + $0x10] sm:$0xff]   ;;  %vm3613_vm2 = vmmov 0   ;;  %s4302_s27 = scalar_lea.vmem %s4243_s1, %s3774_s18  ;;  %s4306_s0 = scalar_lea.vmem %s4249_s7, %s3774_s18 }
  0x3b   : > { %v718_v2 = vsel %vm717_vm1, %v708_v1, 0.0  ;;  %v3424_v8 = vld [vmem:[%s3793_s16] sm:$0xff]   ;;  %3101 = vmatprep.subr.bf16.mxu0 %v3612_v10  ;;  %3113 = vmatprep.subr.bf16.mxu1 %v3612_v10  ;;  %v3427_v12 = vld [vmem:[%s3793_s16 + $0x28] sm:$0xff]   ;;  %v3429_v14 = vld [vmem:[%s3793_s16 + $0x30] sm:$0xff]   ;;  %s4303_s24 = sld [smem:[#allocation20_spill]]  ;;  %vm1763_vm3 = vcmask 130048  }
  0x3c   : > { %719 = vadd.xlane.f32.xlu0 %v718_v2  ;;  %v3425_v9 = vld [vmem:[%s3793_s16 + $0x20] sm:$0xff]   ;;  %3102 = vmatpush3.bf16.msra.mxu0 %v3424_v8  ;;  %v3430_v15 = vld [vmem:[%s3793_s16 + $0x18] sm:$0xff]   ;;  %v3434_v29 = vld [vmem:[%s3793_s16 + $0x48] sm:$0xff]   ;;  %vm2000_vm4 = vcmask 1043456   ;;  %vm1948_vm6 = vcmask 64512  }
  0x3d   : > { %3114 = vmatpush3.bf16.msra.mxu1 %v3425_v9  ;;  %3103 = vmatprep.subr.bf16.mxu0 %v3612_v10  ;;  %v3431_v16 = vld [vmem:[%s3793_s16 + $0x38] sm:$0xff]   ;;  %v2894_v21 = vld [vmem:[%s4302_s27] ss:$0 sm:$0xff]  ;;  %v3435_v30 = vld [vmem:[%s3793_s16 + $0x68] sm:$0xff]  }
  0x3e   : > { %3115 = vmatprep.subr.bf16.mxu1 %v3612_v10  ;;  %3109 = vmatprep.mubr.msk.bf16.mxu0 %vm3613_vm2, %v3612_v10  ;;  %v3432_v26 = vld [vmem:[%s3793_s16 + $0x40] sm:$0xff]   ;;  %v3436_v31 = vld [vmem:[%s3793_s16 + $0x50] sm:$0xff]   ;;  %v3438_v33 = vld [vmem:[%s3793_s16 + $0x58] sm:$0xff]  }
  0x3f   : > { %3121 = vmatprep.mubr.msk.bf16.mxu1 %vm3613_vm2, %v3612_v10  ;;  %v3433_v27 = vld [vmem:[%s3793_s16 + $0x60] sm:$0xff]   ;;  %v3437_v32 = vld [vmem:[%s3793_s16 + $0x70] sm:$0xff]   ;;  %v3439_v34 = vld [vmem:[%s3793_s16 + $0x78] sm:$0xff]  }
  0x40   : > { %3104 = vmatpush3.bf16.msra.mxu0 %v3426_v11  ;;  %v3440_v35 = vld [vmem:[%s3793_s16 + $0x80] sm:$0xff]   ;;  %v3442_v37 = vld [vmem:[%s3793_s16 + $0x88] sm:$0xff]   ;;  %v3444_v39 = vld [vmem:[%s3793_s16 + $0x90] sm:$0xff]  }
  0x41   : > { %3116 = vmatpush3.bf16.msra.mxu1 %v3427_v12  ;;  %3105 = vmatprep.subr.bf16.mxu0 %v3612_v10  ;;  %s4304_s28 = scalar_lea.vmem %s4303_s24, %s3774_s18  ;;  %v3441_v36 = vld [vmem:[%s3793_s16 + $0xa0] sm:$0xff]   ;;  %v3443_v38 = vld [vmem:[%s3793_s16 + $0xa8] sm:$0xff]   ;;  %v3445_v40 = vld [vmem:[%s3793_s16 + $0xb0] sm:$0xff]   ;;  %v709_v12 = vlaneseq }
  0x42   : > { %3117 = vmatprep.subr.bf16.mxu1 %v3612_v10  ;;  %v2895_v23 = vld [vmem:[%s4304_s28] ss:$0 sm:$0xff]  ;;  %v3446_v41 = vld [vmem:[%s3793_s16 + $0x98] sm:$0xff]   ;;  %v3450_v45 = vld [vmem:[%s3793_s16 + $0xc8] sm:$0xff]  }
  0x43   : > { %v3447_v42 = vld [vmem:[%s3793_s16 + $0xb8] sm:$0xff]   ;;  %v3448_v43 = vld [vmem:[%s3793_s16 + $0xc0] sm:$0xff]   ;;  %v3451_v46 = vld [vmem:[%s3793_s16 + $0xe8] sm:$0xff]  }
  0x44   : > { %3106 = vmatpush3.bf16.msra.mxu0 %v3428_v13  ;;  %v3449_v44 = vld [vmem:[%s3793_s16 + $0xe0] sm:$0xff]   ;;  %v3452_v47 = vld [vmem:[%s3793_s16 + $0xd0] sm:$0xff]   ;;  %v3454_v49 = vld [vmem:[%s3793_s16 + $0xd8] sm:$0xff]   ;;  %v3614_v13 = vmov 1966171168  }
  0x45   : > { %3118 = vmatpush3.bf16.msra.mxu1 %v3429_v14  ;;  %3107 = vmatprep.subr.bf16.mxu0 %v3612_v10  ;;  %v3453_v48 = vld [vmem:[%s3793_s16 + $0xf0] sm:$0xff]   ;;  %v3455_v50 = vld [vmem:[%s3793_s16 + $0xf8] sm:$0xff]   ;;  %v3456_v51 = vld [vmem:[%s3793_s16 + $0x100] sm:$0xff]   ;;  %v849_v14 = vunpack.c.l.s4 %v3614_v13 }
  0x46   : > { %3119 = vmatprep.subr.bf16.mxu1 %v3612_v10  ;;  %v3457_v52 = vld [vmem:[%s3793_s16 + $0x120] sm:$0xff]   ;;  %v3458_v53 = vld [vmem:[%s3793_s16 + $0x108] sm:$0xff]   ;;  %v3460_v55 = vld [vmem:[%s3793_s16 + $0x110] sm:$0xff]  }
  0x47   : > { %v3459_v54 = vld [vmem:[%s3793_s16 + $0x128] sm:$0xff]   ;;  %v3461_v56 = vld [vmem:[%s3793_s16 + $0x130] sm:$0xff]   ;;  %v3462_v57 = vld [vmem:[%s3793_s16 + $0x118] sm:$0xff]  }
  0x48   : > { %3108 = vmatpush3.bf16.msra.mxu0 %v3430_v15  ;;  %v3463_v58 = vld [vmem:[%s3793_s16 + $0x138] sm:$0xff]   ;;  %v3464_v59 = vld [vmem:[%s3793_s16 + $0x140] sm:$0xff]   ;;  %v3466_v61 = vld [vmem:[%s3793_s16 + $0x148] sm:$0xff]   ;;  %v4005_v15 = vshrl.u32 %v709_v12, 7 }
  0x49   : > { %3120 = vmatpush3.bf16.msra.mxu1 %v3431_v16  ;;  %3125 = vmatprep.subr.bf16.mxu0 %v3612_v10  ;;  %v3465_v60 = vld [vmem:[%s3793_s16 + $0x160] sm:$0xff]   ;;  %v3467_v62 = vld [vmem:[%s3793_s16 + $0x168] sm:$0xff]   ;;  %v3468_v63 = vld [vmem:[%s3793_s16 + $0x150] sm:$0xff]   ;;  %v850_v16 = vunpack.c.0.s8 %v849_v14 }
  0x4a   : > { %3137 = vmatprep.subr.bf16.mxu1 %v3612_v10  ;;  %v3469_v0 = vld [vmem:[%s3793_s16 + $0x170] sm:$0xff]   ;;  %v3471_v2 = vld [vmem:[%s3793_s16 + $0x178] sm:$0xff]  }
  0xc9   : > { %v720_v3 = vpop.xlane.xlu0 %719 }
  0xca   : > { %v722_v4 = vmul.f32 0.015625, %v720_v3 }
  0xcc   : > { %v723_v5 = vsub.f32 %v708_v1, %v722_v4  ;;  %v3470_v1 = vld [vmem:[%s3793_s16 + $0x158] sm:$0xff]  }
  0xce   : > { %v724_v6 = vmul.f32 %v723_v5, %v723_v5 }
  0xd0   : > { %v725_v7 = vsel %vm717_vm1, %v724_v6, 0.0 }
  0xd1   : > { %726 = vadd.xlane.f32.xlu0 %v725_v7 }
 0x15e   : > { %v727_v17 = vpop.xlane.xlu0 %726 }
 0x15f   : > { %v728_v18 = vmul.f32 0.015625, %v727_v17  ;;  %v843_v17 = vld [vmem:[%s3798_s17] sm:$0xff] }
 0x161   : > { %v729_v19 = vadd.f32 1e-05, %v728_v18 }
 0x163   : > { %3489 = vrsqrt.f32 %v729_v19 }
 0x16d   : > { %v3490_v20 = vpop.eup %3489 }
 0x16e   : > { %v731_v22 = vmul.f32 %v3490_v20, %v723_v5 }
 0x170   : > { %v738_v24 = vmul.f32 %v2894_v21, %v731_v22  ;;  %v847_v22 = vcombine.high %v843_v17, %v843_v17 }
 0x172   : > { %v745_v25 = vadd.f32 %v2895_v23, %v738_v24 }
 0x174   : > { %v3874_v28 = vpack.c.bf16 %v745_v25, %v745_v25  ;;  %v4013_v25 = vsub.s32 %v850_v16, %v4005_v15 }
 0x176   : > { %3110 = vmatmul.mubr.msk.bf16.vlgmr.msra.gmra.mrb[0].mxu0 %vm717_vm1, %v3874_v28  ;;  %3122 = vmatmul.mubr.msk.bf16.vlgmr.msra.gmra.mrb[0].mxu1 %vm717_vm1, %v3874_v28 }
 0x177   : > { %3126 = vmatpush3.bf16.msra.mxu0 %v3432_v26  ;;  %3138 = vmatpush3.bf16.msra.mxu1 %v3433_v27 }
 0x178   : > { %3127 = vmatprep.subr.bf16.mxu0 %v3612_v10  ;;  %3139 = vmatprep.subr.bf16.mxu1 %v3612_v10 }
 0x179   : > { %3133 = vmatprep.mubr.msk.bf16.mxu0 %vm3613_vm2, %v3612_v10  ;;  %3145 = vmatprep.mubr.msk.bf16.mxu1 %vm3613_vm2, %v3612_v10 }
 0x17b   : > { %3128 = vmatpush3.bf16.msra.mxu0 %v3434_v29  ;;  %3140 = vmatpush3.bf16.msra.mxu1 %v3435_v30 }
 0x17c   : > { %3129 = vmatprep.subr.bf16.mxu0 %v3612_v10  ;;  %3141 = vmatprep.subr.bf16.mxu1 %v3612_v10 }
 0x17f   : > { %3130 = vmatpush3.bf16.msra.mxu0 %v3436_v31  ;;  %3142 = vmatpush3.bf16.msra.mxu1 %v3437_v32  ;;  %v4018_v31 = vsub.s32 0, %v4005_v15  ;;  %v854_v32 = vrot.slane %v843_v17, %v4013_v25 }
 0x180   : > { %3131 = vmatprep.subr.bf16.mxu0 %v3612_v10  ;;  %3143 = vmatprep.subr.bf16.mxu1 %v3612_v10 }
 0x183   : > { %3132 = vmatpush3.bf16.msra.mxu0 %v3438_v33  ;;  %3144 = vmatpush3.bf16.msra.mxu1 %v3439_v34 }
 0x184   : > { %3149 = vmatprep.subr.bf16.mxu0 %v3612_v10  ;;  %3161 = vmatprep.subr.bf16.mxu1 %v3612_v10 }
 0x186   : > { %3134 = vmatmul.mubr.msk.bf16.vlgmr.msra.gmra.mrb[4].mxu0 %vm717_vm1, %v3874_v28  ;;  %3146 = vmatmul.mubr.msk.bf16.vlgmr.msra.gmra.mrb[4].mxu1 %vm717_vm1, %v3874_v28 }
 0x187   : > { %3150 = vmatpush3.bf16.msra.mxu0 %v3440_v35  ;;  %3162 = vmatpush3.bf16.msra.mxu1 %v3441_v36  ;;  %v870_v35 = vrot.slane %v854_v32, %v4013_v25 }
 0x188   : > { %3151 = vmatprep.subr.bf16.mxu0 %v3612_v10  ;;  %3163 = vmatprep.subr.bf16.mxu1 %v3612_v10 }
 0x189   : > { %3157 = vmatprep.mubr.msk.bf16.mxu0 %vm3613_vm2, %v3612_v10  ;;  %3169 = vmatprep.mubr.msk.bf16.mxu1 %vm3613_vm2, %v3612_v10 }
 0x18b   : > { %3152 = vmatpush3.bf16.msra.mxu0 %v3442_v37  ;;  %3164 = vmatpush3.bf16.msra.mxu1 %v3443_v38 }
 0x18c   : > { %3153 = vmatprep.subr.bf16.mxu0 %v3612_v10  ;;  %3165 = vmatprep.subr.bf16.mxu1 %v3612_v10 }
 0x18f   : > { %3154 = vmatpush3.bf16.msra.mxu0 %v3444_v39  ;;  %3166 = vmatpush3.bf16.msra.mxu1 %v3445_v40 }
 0x190   : > { %3155 = vmatprep.subr.bf16.mxu0 %v3612_v10  ;;  %3167 = vmatprep.subr.bf16.mxu1 %v3612_v10 }
 0x193   : > { %3156 = vmatpush3.bf16.msra.mxu0 %v3446_v41  ;;  %3168 = vmatpush3.bf16.msra.mxu1 %v3447_v42 }
 0x194   : > { %3173 = vmatprep.subr.bf16.mxu0 %v3612_v10  ;;  %3185 = vmatprep.subr.bf16.mxu1 %v3612_v10 }
 0x196   : > { %3158 = vmatmul.mubr.msk.bf16.vlgmr.msra.gmra.mrb[8].mxu0 %vm717_vm1, %v3874_v28  ;;  %3170 = vmatmul.mubr.msk.bf16.vlgmr.msra.gmra.mrb[8].mxu1 %vm717_vm1, %v3874_v28 }
 0x197   : > { %3174 = vmatpush3.bf16.msra.mxu0 %v3448_v43  ;;  %3186 = vmatpush3.bf16.msra.mxu1 %v3449_v44  ;;  %v923_v44 = vrot.slane %v870_v35, %v4018_v31 }
 0x198   : > { %3175 = vmatprep.subr.bf16.mxu0 %v3612_v10  ;;  %3187 = vmatprep.subr.bf16.mxu1 %v3612_v10 }
 0x199   : > { %3181 = vmatprep.mubr.msk.bf16.mxu0 %vm3613_vm2, %v3612_v10  ;;  %3193 = vmatprep.mubr.msk.bf16.mxu1 %vm3613_vm2, %v3612_v10 }
 0x19b   : > { %3176 = vmatpush3.bf16.msra.mxu0 %v3450_v45  ;;  %3188 = vmatpush3.bf16.msra.mxu1 %v3451_v46  ;;  %v862_v45 = vcombine.high %v854_v32, %v854_v32 }
 0x19c   : > { %3177 = vmatprep.subr.bf16.mxu0 %v3612_v10  ;;  %3189 = vmatprep.subr.bf16.mxu1 %v3612_v10 }
 0x19f   : > { %3178 = vmatpush3.bf16.msra.mxu0 %v3452_v47  ;;  %3190 = vmatpush3.bf16.msra.mxu1 %v3453_v48 }
 0x1a0   : > { %3179 = vmatprep.subr.bf16.mxu0 %v3612_v10  ;;  %3191 = vmatprep.subr.bf16.mxu1 %v3612_v10 }
 0x1a3   : > { %3180 = vmatpush3.bf16.msra.mxu0 %v3454_v49  ;;  %3192 = vmatpush3.bf16.msra.mxu1 %v3455_v50 }
 0x1a4   : > { %3197 = vmatprep.subr.bf16.mxu0 %v3612_v10  ;;  %3209 = vmatprep.subr.bf16.mxu1 %v3612_v10 }
 0x1a6   : > { %3182 = vmatmul.mubr.msk.bf16.vlgmr.msra.gmra.mrb[12].mxu0 %vm717_vm1, %v3874_v28  ;;  %3194 = vmatmul.mubr.msk.bf16.vlgmr.msra.gmra.mrb[12].mxu1 %vm717_vm1, %v3874_v28 }
 0x1a7   : > { %3198 = vmatpush3.bf16.msra.mxu0 %v3456_v51  ;;  %3210 = vmatpush3.bf16.msra.mxu1 %v3457_v52  ;;  %v884_v52 = vrot.slane %v862_v45, %v4013_v25 }
 0x1a8   : > { %3199 = vmatprep.subr.bf16.mxu0 %v3612_v10  ;;  %3211 = vmatprep.subr.bf16.mxu1 %v3612_v10 }
 0x1a9   : > { %3205 = vmatprep.mubr.msk.bf16.mxu0 %vm3613_vm2, %v3612_v10  ;;  %3217 = vmatprep.mubr.msk.bf16.mxu1 %vm3613_vm2, %v3612_v10 }
 0x1ab   : > { %3200 = vmatpush3.bf16.msra.mxu0 %v3458_v53  ;;  %3212 = vmatpush3.bf16.msra.mxu1 %v3459_v54 }
 0x1ac   : > { %3201 = vmatprep.subr.bf16.mxu0 %v3612_v10  ;;  %3213 = vmatprep.subr.bf16.mxu1 %v3612_v10 }
 0x1af   : > { %3202 = vmatpush3.bf16.msra.mxu0 %v3460_v55  ;;  %3214 = vmatpush3.bf16.msra.mxu1 %v3461_v56 }
 0x1b0   : > { %3203 = vmatprep.subr.bf16.mxu0 %v3612_v10  ;;  %3215 = vmatprep.subr.bf16.mxu1 %v3612_v10 }
 0x1b3   : > { %3204 = vmatpush3.bf16.msra.mxu0 %v3462_v57  ;;  %3216 = vmatpush3.bf16.msra.mxu1 %v3463_v58  ;;  %v927_v57 = vrot.slane %v884_v52, %v4018_v31 }
 0x1b4   : > { %3221 = vmatprep.subr.bf16.mxu0 %v3612_v10  ;;  %3233 = vmatprep.subr.bf16.mxu1 %v3612_v10 }
 0x1b6   : > { %3206 = vmatmul.mubr.msk.bf16.vlgmr.msra.gmra.mrb[16].mxu0 %vm717_vm1, %v3874_v28  ;;  %3218 = vmatmul.mubr.msk.bf16.vlgmr.msra.gmra.mrb[16].mxu1 %vm717_vm1, %v3874_v28 }
 0x1b7   : > { %3222 = vmatpush3.bf16.msra.mxu0 %v3464_v59  ;;  %3234 = vmatpush3.bf16.msra.mxu1 %v3465_v60 }
 0x1b8   : > { %3223 = vmatprep.subr.bf16.mxu0 %v3612_v10  ;;  %3235 = vmatprep.subr.bf16.mxu1 %v3612_v10 }
 0x1b9   : > { %3229 = vmatprep.mubr.msk.bf16.mxu0 %vm3613_vm2, %v3612_v10  ;;  %3241 = vmatprep.mubr.msk.bf16.mxu1 %vm3613_vm2, %v3612_v10 }
 0x1bb   : > { %3224 = vmatpush3.bf16.msra.mxu0 %v3466_v61  ;;  %3236 = vmatpush3.bf16.msra.mxu1 %v3467_v62  ;;  %v892_v61 = vcombine.high %v870_v35, %v870_v35 }
 0x1bc   : > { %3225 = vmatprep.subr.bf16.mxu0 %v3612_v10  ;;  %3237 = vmatprep.subr.bf16.mxu1 %v3612_v10 }
 0x1bf   : > { %3226 = vmatpush3.bf16.msra.mxu0 %v3468_v63  ;;  %3238 = vmatpush3.bf16.msra.mxu1 %v3469_v0  ;;  %v894_v63 = vcombine.high %v884_v52, %v884_v52 }
 0x1c0   : > { %3227 = vmatprep.subr.bf16.mxu0 %v3612_v10  ;;  %3239 = vmatprep.subr.bf16.mxu1 %v3612_v10 }
 0x1c1   : > { %v935_v14 = vrot.slane %v894_v63, %v4018_v31 }
 0x1c3   : > { %3228 = vmatpush3.bf16.msra.mxu0 %v3470_v1  ;;  %3240 = vmatpush3.bf16.msra.mxu1 %v3471_v2 }
 0x1c4   : > { %3245 = vmatprep.subr.bf16.mxu0 %v3612_v10  ;;  %3263 = vmatprep.subr.bf16.mxu1 %v3612_v10 }
 0x1c6   : > { %3230 = vmatmul.mubr.msk.bf16.vlgmr.msra.gmra.mrb[20].mxu0 %vm717_vm1, %v3874_v28  ;;  %3242 = vmatmul.mubr.msk.bf16.vlgmr.msra.gmra.mrb[20].mxu1 %vm717_vm1, %v3874_v28  ;;  %v861_v28 = vrot.slane %v847_v22, %v4013_v25 }
 0x1c7   : > { %3247 = vmatprep.mubr.msk.bf16.mxu0 %vm3613_vm2, %v3612_v10  ;;  %3265 = vmatprep.mubr.msk.bf16.mxu1 %vm3613_vm2, %v3612_v10 }
 0x1c8   : > { %v877_v29 = vrot.slane %v861_v28, %v4013_v25  ;;  %v863_v30 = vcombine.high %v861_v28, %v861_v28 }
 0x1ca   : > { %v939_v33 = vrot.slane %v877_v29, %v4018_v31  ;;  %v891_v34 = vrot.slane %v863_v30, %v4013_v25  ;;  %v893_v54 = vcombine.high %v877_v29, %v877_v29 }
 0x1cc   : > { %v943_v39 = vrot.slane %v891_v34, %v4018_v31  ;;  %v895_v55 = vcombine.high %v891_v34, %v891_v34  ;;  %v947_v59 = vrot.slane %v893_v54, %v4018_v31 }
 0x1ce   : > { %v951_v60 = vrot.slane %v895_v55, %v4018_v31 }
 0x249   : > { %v1041_v3 = vpop.f32.mrb[0].mxu0  ;;  %v4002_v4 = vpop.f32.mrb[0].mxu1 }
 0x24a   : > { %v3111_v5 = vpop.f32.mrb[1].mxu0  ;;  %v3123_v6 = vpop.f32.mrb[1].mxu1  ;;  %v1042_v51 = vadd.f32 %v1041_v3, %v923_v44  ;;  %v1106_v62 = vadd.f32 %v4002_v4, %v927_v57 }
 0x24b   : > { %v1044_v7 = vpop.f32.mrb[2].mxu0  ;;  %v1108_v8 = vpop.f32.mrb[2].mxu1 }
 0x24c   : > { %v3112_v9 = vpop.f32.mrb[3].mxu0  ;;  %v3124_v11 = vpop.f32.mrb[3].mxu1  ;;  %v1751_v56 = vpack.c.bf16 %v1042_v51, %v1042_v51  ;;  %v931_v7 = vrot.slane %v892_v61, %v4018_v31  ;;  %v1752_v13 = vpack.c.bf16 %v1106_v62, %v1106_v62 }
 0x24d   : > { %v2896_v11 = vld.sshfl [vmem:[%s3798_s17 + $0x8] sm:$0x33 pattern:$0x75316420]  ;;  %s4305_s17 = scalar_lea.vmem %s4248_s6, %s3774_s18 }
 0x259   : > { %v4008_v18 = vpop.f32.mrb[4].mxu0  ;;  %v4010_v19 = vpop.f32.mrb[4].mxu1 }
 0x25a   : > { %v3135_v20 = vpop.f32.mrb[5].mxu0  ;;  %v3147_v21 = vpop.f32.mrb[5].mxu1 }
 0x25b   : > { %v1172_v23 = vpop.f32.mrb[6].mxu0  ;;  %v1236_v24 = vpop.f32.mrb[6].mxu1 }
 0x25c   : > { %v3136_v26 = vpop.f32.mrb[7].mxu0  ;;  %v3148_v27 = vpop.f32.mrb[7].mxu1  ;;  %v903_v23 = vcombine.high %v2896_v11, %v2896_v11  ;;  %v1170_v24 = vadd.f32 %v4008_v18, %v931_v7 }
 0x25d   : > { %v1234_v26 = vadd.f32 %v4010_v19, %v935_v14  ;;  %v910_v27 = vrot.slane %v2896_v11, %v4013_v25 }
 0x25e   : > { %v917_v28 = vrot.slane %v903_v23, %v4013_v25  ;;  %v1753_v29 = vpack.c.bf16 %v1170_v24, %v1170_v24 }
 0x25f   : > { %v1754_v30 = vpack.c.bf16 %v1234_v26, %v1234_v26  ;;  %v955_v18 = vrot.slane %v910_v27, %v4018_v31  ;;  %v918_v45 = vcombine.high %v910_v27, %v910_v27 }
 0x260   : > { %v959_v19 = vrot.slane %v917_v28, %v4018_v31 }
 0x269   : > { %v1297_v36 = vpop.f32.mrb[8].mxu0  ;;  %v1361_v37 = vpop.f32.mrb[8].mxu1 }
 0x26a   : > { %v1298_v38 = vadd.f32 %v1297_v36, %v939_v33  ;;  %v3159_v40 = vpop.f32.mrb[9].mxu0  ;;  %v3171_v41 = vpop.f32.mrb[9].mxu1  ;;  %v1362_v50 = vadd.f32 %v1361_v37, %v943_v39 }
 0x26b   : > { %v1300_v42 = vpop.f32.mrb[10].mxu0  ;;  %v1364_v43 = vpop.f32.mrb[10].mxu1 }
 0x26c   : > { %v1755_v46 = vpack.c.bf16 %v1298_v38, %v1298_v38  ;;  %v3160_v47 = vpop.f32.mrb[11].mxu0  ;;  %v3172_v48 = vpop.f32.mrb[11].mxu1  ;;  %v1756_v53 = vpack.c.bf16 %v1362_v50, %v1362_v50 }
 0x26d   : > { %v963_v47 = vrot.slane %v918_v45, %v4018_v31 }
 0x26e   : > { %v1768_v49 = vsel %vm1763_vm3, %v1755_v46, 0  ;;  %v1814_v58 = vsel %vm1763_vm3, %v1756_v53, 0  ;;  %v919_v46 = vcombine.high %v917_v28, %v917_v28 }
 0x26f   : > { %3246 = vmatpush3.bf16.xpose.msra.mxu0 %v1768_v49 }
 0x270   : > { %3251 = vmatprep.subr.bf16.mxu0 %v3612_v10  ;;  %v967_v48 = vrot.slane %v919_v46, %v4018_v31  ;;  %v712_v31 = vand.u32 127, %v709_v12 }
 0x272   : > { %vm713_vm5 = vcmp.gt.s32.totalorder %v712_v31, %v4005_v15  ;;  %v3474_v31 = vld [vmem:[%s3803_s20 + $0x8] sm:$0xff]  }
 0x273   : > { %v714_v63 = vsel %vm713_vm5, -1e+09, %v3612_v10 }
 0x276   : > { %3248 = vmatmul.mubr.msk.bf16.vlgmr.msra.gmra.mrb[24].mxu0 %vm1763_vm3, %v1751_v56 }
 0x277   : > { %3252 = vmatpush3.bf16.xpose.msra.mxu0 %v1814_v58  ;;  %3253 = vmatprep.mubr.msk.bf16.mxu0 %vm3613_vm2, %v3612_v10 }
 0x278   : > { %3257 = vmatprep.subr.bf16.mxu0 %v3612_v10 }
 0x279   : > { %v1425_v0 = vpop.f32.mrb[12].mxu0  ;;  %v1489_v1 = vpop.f32.mrb[12].mxu1 }
 0x27a   : > { %v1426_v2 = vadd.f32 %v1425_v0, %v947_v59  ;;  %v1490_v3 = vadd.f32 %v1489_v1, %v951_v60  ;;  %v3183_v5 = vpop.f32.mrb[13].mxu0  ;;  %v3195_v6 = vpop.f32.mrb[13].mxu1 }
 0x27b   : > { %v1428_v8 = vpop.f32.mrb[14].mxu0  ;;  %v1492_v9 = vpop.f32.mrb[14].mxu1 }
 0x27c   : > { %v1757_v16 = vpack.c.bf16 %v1426_v2, %v1426_v2  ;;  %v1758_v17 = vpack.c.bf16 %v1490_v3, %v1490_v3  ;;  %v3184_v4 = vpop.f32.mrb[15].mxu0  ;;  %v3196_v20 = vpop.f32.mrb[15].mxu1 }
 0x27e   : > { %v1860_v21 = vsel %vm1763_vm3, %v1757_v16, 0  ;;  %v1906_v22 = vsel %vm1763_vm3, %v1758_v17, 0  ;;  %3254 = vmatmul.mubr.msk.bf16.vlgmr.msra.gmra.mrb[28].mxu0 %vm1763_vm3, %v1752_v13 }
 0x27f   : > { %3258 = vmatpush3.bf16.xpose.msra.mxu0 %v1860_v21  ;;  %3264 = vmatpush3.bf16.xpose.msra.mxu1 %v1906_v22 }
 0x280   : > { %3259 = vmatprep.mubr.msk.bf16.mxu0 %vm3613_vm2, %v3612_v10  ;;  %3269 = vmatprep.subr.bf16.mxu0 %v3612_v10 }
 0x281   : > { %3275 = vmatprep.subr.bf16.mxu1 %v3612_v10 }
 0x286   : > { %3260 = vmatmul.mubr.msk.bf16.vlgmr.msra.gmra.mrb[32].mxu0 %vm1763_vm3, %v1753_v29  ;;  %3266 = vmatmul.mubr.msk.bf16.vlgmr.msra.gmra.mrb[24].mxu1 %vm1763_vm3, %v1754_v30 }
 0x287   : > { %3271 = vmatprep.mubr.msk.bf16.mxu0 %vm3613_vm2, %v3612_v10  ;;  %3277 = vmatprep.mubr.msk.bf16.mxu1 %vm3613_vm2, %v3612_v10 }
 0x289   : > { %v1553_v32 = vpop.f32.mrb[16].mxu0  ;;  %v1617_v33 = vpop.f32.mrb[16].mxu1 }
 0x28a   : > { %v1554_v34 = vadd.f32 %v1553_v32, %v955_v18  ;;  %v1618_v25 = vadd.f32 %v1617_v33, %v959_v19  ;;  %v3207_v35 = vpop.f32.mrb[17].mxu0  ;;  %v3219_v36 = vpop.f32.mrb[17].mxu1 }
 0x28b   : > { %v1556_v37 = vpop.f32.mrb[18].mxu0  ;;  %v1620_v38 = vpop.f32.mrb[18].mxu1 }
 0x28c   : > { %v1759_v39 = vpack.c.bf16 %v1554_v34, %v1554_v34  ;;  %v1760_v40 = vpack.c.bf16 %v1618_v25, %v1618_v25  ;;  %v3208_v41 = vpop.f32.mrb[19].mxu0  ;;  %v3220_v42 = vpop.f32.mrb[19].mxu1 }
 0x28e   : > { %v2002_v43 = vsel %vm2000_vm4, %v1759_v39, 0  ;;  %v2048_v44 = vsel %vm2000_vm4, %v1760_v40, 0 }
 0x28f   : > { %3270 = vmatpush3.bf16.msra.mxu0 %v2002_v43  ;;  %3276 = vmatpush3.bf16.msra.mxu1 %v2048_v44 }
 0x290   : > { %3281 = vmatprep.subr.bf16.mxu0 %v3612_v10  ;;  %3287 = vmatprep.subr.bf16.mxu1 %v3612_v10 }
 0x299   : > { %v1681_v49 = vpop.f32.mrb[20].mxu0  ;;  %v1745_v50 = vpop.f32.mrb[20].mxu1 }
 0x29a   : > { %v1682_v51 = vadd.f32 %v1681_v49, %v963_v47  ;;  %v1746_v52 = vadd.f32 %v1745_v50, %v967_v48  ;;  %v3231_v53 = vpop.f32.mrb[21].mxu0  ;;  %v3243_v54 = vpop.f32.mrb[21].mxu1 }
 0x29b   : > { %v1684_v55 = vpop.f32.mrb[22].mxu0  ;;  %v1748_v56 = vpop.f32.mrb[22].mxu1 }
 0x29c   : > { %v1761_v57 = vpack.c.bf16 %v1682_v51, %v1682_v51  ;;  %v1762_v58 = vpack.c.bf16 %v1746_v52, %v1746_v52  ;;  %v3232_v59 = vpop.f32.mrb[23].mxu0  ;;  %v3244_v60 = vpop.f32.mrb[23].mxu1 }
 0x29e   : > { %v4067_v61 = vsel %vm2000_vm4, %v1761_v57, 0  ;;  %v4070_v62 = vsel %vm2000_vm4, %v1762_v58, 0 }
 0x349   : > { %v1804_v0 = vpop.f32.mrb[24].mxu0 }
 0x34a   : > { %v1805_v1 = vadd.f32 %v1804_v0, %v714_v63  ;;  %v3249_v2 = vpop.f32.mrb[25].mxu0  ;;  %v3475_v0 = vld [vmem:[%s3803_s20 + $0x10] sm:$0xff]  }
 0x34b   : > { %v1807_v3 = vpop.f32.mrb[26].mxu0 }
 0x34c   : > { %v3250_v5 = vpop.f32.mrb[27].mxu0  ;;  %v1949_v6 = vsel %vm1948_vm6, %v1805_v1, -inf }
 0x34d   : > { %1950 = vmax.xlane.f32.xlu1 %v1949_v6 }
 0x351   : > { %v1850_v7 = vpop.f32.mrb[28].mxu0 }
 0x352   : > { %v1851_v8 = vadd.f32 %v1850_v7, %v714_v63  ;;  %v3255_v9 = vpop.f32.mrb[29].mxu0  ;;  %v3476_v7 = vld [vmem:[%s3803_s20 + $0x18] sm:$0xff]  }
 0x353   : > { %v1853_v11 = vpop.f32.mrb[30].mxu0 }
 0x354   : > { %v3256_v13 = vpop.f32.mrb[31].mxu0  ;;  %v1952_v12 = vsel %vm1948_vm6, %v1851_v8, -inf }
 0x355   : > { %1953 = vmax.xlane.f32.xlu1 %v1952_v12 }
 0x359   : > { %v1896_v15 = vpop.f32.mrb[32].mxu0  ;;  %v1942_v14 = vpop.f32.mrb[24].mxu1 }
 0x35a   : > { %v1897_v16 = vadd.f32 %v1896_v15, %v714_v63  ;;  %v1943_v17 = vadd.f32 %v1942_v14, %v714_v63  ;;  %v3261_v4 = vpop.f32.mrb[33].mxu0  ;;  %v3267_v20 = vpop.f32.mrb[25].mxu1 }
 0x35b   : > { %v1899_v21 = vpop.f32.mrb[34].mxu0  ;;  %v1945_v22 = vpop.f32.mrb[26].mxu1 }
 0x35c   : > { %v3262_v23 = vpop.f32.mrb[35].mxu0  ;;  %v3268_v24 = vpop.f32.mrb[27].mxu1  ;;  %v1958_v26 = vsel %vm1948_vm6, %v1943_v17, -inf  ;;  %v1955_v27 = vsel %vm1948_vm6, %v1897_v16, -inf }
 0x35d   : > { %1959 = vmax.xlane.f32.xlu1 %v1958_v26  ;;  %1956 = vmax.xlane.f32.xlu0 %v1955_v27 }
 0x3da   : > { %v1951_v28 = vpop.xlane.xlu1 %1950 }
 0x3db   : > { %v1961_v29 = vsub.f32 %v1805_v1, %v1951_v28 }
 0x3dd   : > { %v1965_v30 = vmul.f32 1.442695, %v1961_v29 }
 0x3df   : > { %3491 = vpow2.f32 %v1965_v30 }
 0x3e2   : > { %v1954_v18 = vpop.xlane.xlu1 %1953 }
 0x3e3   : > { %v1962_v19 = vsub.f32 %v1851_v8, %v1954_v18 }
 0x3e5   : > { %v1967_v32 = vmul.f32 1.442695, %v1962_v19 }
 0x3e7   : > { %3493 = vpow2.f32 %v1967_v32 }
 0x3e9   : > { %v3492_v33 = vpop.eup %3491 }
 0x3ea   : > { %v1960_v34 = vpop.xlane.xlu1 %1959  ;;  %v1957_v25 = vpop.xlane.xlu0 %1956  ;;  %v1973_v35 = vsel %vm1948_vm6, %v3492_v33, 0.0 }
 0x3eb   : > { %v1964_v36 = vsub.f32 %v1943_v17, %v1960_v34  ;;  %v1963_v37 = vsub.f32 %v1897_v16, %v1957_v25  ;;  %1974 = vadd.xlane.f32.xlu0 %v1973_v35 }
 0x3ed   : > { %v1971_v38 = vmul.f32 1.442695, %v1964_v36  ;;  %v1969_v39 = vmul.f32 1.442695, %v1963_v37 }
 0x3ef   : > { %3495 = vpow2.f32 %v1971_v38  ;;  %v2973_v38 = vld [vmem:[%s4305_s17] ss:$0 sm:$0xff] }
 0x3f0   : > { %3497 = vpow2.f32 %v1969_v39 }
 0x3f1   : > { %v3494_v40 = vpop.eup %3493 }
 0x3f2   : > { %v1976_v41 = vsel %vm1948_vm6, %v3494_v40, 0.0 }
 0x3f3   : > { %1977 = vadd.xlane.f32.xlu1 %v1976_v41 }
 0x3f9   : > { %v3496_v42 = vpop.eup %3495 }
 0x3fa   : > { %v3498_v43 = vpop.eup %3497  ;;  %v1982_v44 = vsel %vm1948_vm6, %v3496_v42, 0.0 }
 0x3fb   : > { %1983 = vadd.xlane.f32.xlu1 %v1982_v44  ;;  %v1979_v45 = vsel %vm1948_vm6, %v3498_v43, 0.0  ;;  %v3513_v44 = vld [vmem:[#allocation2] sm:$0xff] }
 0x3fc   : > { %1980 = vadd.xlane.f32.xlu0 %v1979_v45 }
 0x478   : > { %v1975_v46 = vpop.xlane.xlu0 %1974 }
 0x479   : > { %3499 = vrcp.f32 %v1975_v46 }
 0x480   : > { %v1978_v47 = vpop.xlane.xlu1 %1977 }
 0x481   : > { %3501 = vrcp.f32 %v1978_v47 }
 0x483   : > { %v3500_v48 = vpop.eup %3499 }
 0x484   : > { %v1989_v49 = vmul.f32 %v3500_v48, %v3492_v33 }
 0x486   : > { %v1993_v50 = vpack.c.bf16 %v1989_v49, %v1989_v49 }
 0x488   : > { %v1984_v51 = vpop.xlane.xlu1 %1983  ;;  %3272 = vmatmul.mubr.msk.bf16.vlgmr.msra.gmra.mrb[36].mxu0 %vm1948_vm6, %v1993_v50 }
 0x489   : > { %3503 = vrcp.f32 %v1984_v51  ;;  %3282 = vmatpush3.bf16.msra.mxu0 %v4067_v61  ;;  %v1981_v52 = vpop.xlane.xlu0 %1980  ;;  %3283 = vmatprep.mubr.msk.bf16.mxu0 %vm3613_vm2, %v3612_v10 }
 0x48a   : > { %3505 = vrcp.f32 %v1981_v52  ;;  %3293 = vmatprep.subr.bf16.mxu0 %v3612_v10  ;;  %v3477_v52 = vld [vmem:[%s3820_s26] sm:$0xff]  }
 0x48b   : > { %v3502_v53 = vpop.eup %3501 }
 0x48c   : > { %v1990_v54 = vmul.f32 %v3502_v53, %v3494_v40  ;;  %v3478_v53 = vld [vmem:[%s3820_s26 + $0x8] sm:$0xff]  }
 0x48e   : > { %v1994_v55 = vpack.c.bf16 %v1990_v54, %v1990_v54  ;;  %v3479_v54 = vld [vmem:[%s3820_s26 + $0x10] sm:$0xff]  }
 0x490   : > { %3278 = vmatmul.mubr.msk.bf16.vlgmr.msra.gmra.mrb[28].mxu1 %vm1948_vm6, %v1994_v55  ;;  %v3480_v55 = vld [vmem:[%s3820_s26 + $0x18] sm:$0xff]  }
 0x491   : > { %3288 = vmatpush3.bf16.msra.mxu1 %v4070_v62  ;;  %3289 = vmatprep.mubr.msk.bf16.mxu1 %vm3613_vm2, %v3612_v10  ;;  %v3473_v62 = vld [vmem:[%s3803_s20] sm:$0xff]  }
 0x492   : > { %3299 = vmatprep.subr.bf16.mxu1 %v3612_v10 }
 0x493   : > { %v3504_v56 = vpop.eup %3503 }
 0x494   : > { %v3506_v57 = vpop.eup %3505  ;;  %v1992_v58 = vmul.f32 %v3504_v56, %v3496_v42 }
 0x495   : > { %v1991_v59 = vmul.f32 %v3506_v57, %v3498_v43 }
 0x496   : > { %v1996_v60 = vpack.c.bf16 %v1992_v58, %v1992_v58 }
 0x497   : > { %v1995_v61 = vpack.c.bf16 %v1991_v59, %v1991_v59 }
 0x498   : > { %3290 = vmatmul.mubr.msk.bf16.vlgmr.msra.gmra.mrb[32].mxu1 %vm1948_vm6, %v1996_v60  ;;  %v2974_v60 = vld [vmem:[%s4306_s0] ss:$0 sm:$0xff] }
 0x499   : > { %3284 = vmatmul.mubr.msk.bf16.vlgmr.msra.gmra.mrb[40].mxu0 %vm1948_vm6, %v1995_v61  ;;  %3301 = vmatprep.mubr.msk.bf16.mxu1 %vm3613_vm2, %v3612_v10 }
 0x49a   : > { %3295 = vmatprep.mubr.msk.bf16.mxu0 %vm3613_vm2, %v3612_v10  ;;  %3294 = vmatpush3.bf16.msra.mxu0 %v3473_v62  ;;  %v2975_v62 = vld [vmem:[%s683_s3] ss:$0 sm:$0xff] }
 0x49b   : > { %3305 = vmatprep.subr.bf16.mxu0 %v3612_v10  ;;  %3300 = vmatpush3.bf16.msra.mxu1 %v3474_v31 }
 0x49c   : > { %3311 = vmatprep.subr.bf16.mxu1 %v3612_v10 }
 0x55b   : > { %v2038_v63 = vpop.f32.mrb[36].mxu0 }
 0x55c   : > { %v2182_v1 = vpack.c.bf16 %v2038_v63, %v2038_v63  ;;  %v3273_v2 = vpop.f32.mrb[37].mxu0 }
 0x55d   : > { %v2041_v3 = vpop.f32.mrb[38].mxu0  ;;  %v3482_v2 = vld [vmem:[%s3834_s13 + $0x8] sm:$0xff]  }
 0x55e   : > { %v3274_v5 = vpop.f32.mrb[39].mxu0  ;;  %3296 = vmatmul.mubr.msk.bf16.vlgmr.msra.gmra.mrb[44].mxu0 %vm1763_vm3, %v2182_v1  ;;  %v3481_v1 = vld [vmem:[%s3834_s13] sm:$0xff]   ;;  %v3483_v3 = vld [vmem:[%s3834_s13 + $0x10] sm:$0xff]  }
 0x55f   : > { %3306 = vmatpush3.bf16.msra.mxu0 %v3475_v0  ;;  %3307 = vmatprep.mubr.msk.bf16.mxu0 %vm3613_vm2, %v3612_v10  ;;  %v3484_v5 = vld [vmem:[%s3834_s13 + $0x18] sm:$0xff]  }
 0x560   : > { %3317 = vmatprep.subr.bf16.mxu0 %v3612_v10 }
 0x563   : > { %v2084_v6 = vpop.f32.mrb[28].mxu1 }
 0x564   : > { %v2183_v8 = vpack.c.bf16 %v2084_v6, %v2084_v6  ;;  %v3279_v9 = vpop.f32.mrb[29].mxu1  ;;  %v3485_v6 = vld [vmem:[%s3834_s13 + $0x20] sm:$0xff]  }
 0x565   : > { %v2087_v11 = vpop.f32.mrb[30].mxu1  ;;  %v3488_v9 = vld [vmem:[%s3834_s13 + $0x38] sm:$0xff]  }
 0x566   : > { %v3280_v13 = vpop.f32.mrb[31].mxu1  ;;  %3302 = vmatmul.mubr.msk.bf16.vlgmr.msra.gmra.mrb[36].mxu1 %vm1763_vm3, %v2183_v8  ;;  %v3487_v8 = vld [vmem:[%s3834_s13 + $0x30] sm:$0xff]   ;;  %v2976_v11 = vld [vmem:[%s691_s4] ss:$0 sm:$0xff]  ;;  %s4307_s4 = sld [smem:[#allocation9_spill]] }
 0x567   : > { %3312 = vmatpush3.bf16.msra.mxu1 %v3476_v7  ;;  %3313 = vmatprep.mubr.msk.bf16.mxu1 %vm3613_vm2, %v3612_v10  ;;  %v3486_v7 = vld [vmem:[%s3834_s13 + $0x28] sm:$0xff]  }
 0x568   : > { %3329 = vmatprep.subr.bf16.mxu1 %v3612_v10 }
 0x56b   : > { %v2176_v12 = vpop.f32.mrb[32].mxu1 }
 0x56c   : > { %v2130_v15 = vpop.f32.mrb[40].mxu0  ;;  %v2185_v14 = vpack.c.bf16 %v2176_v12, %v2176_v12  ;;  %v3291_v16 = vpop.f32.mrb[33].mxu1  ;;  %p2992_p1 = scmp.ne.s32.totalorder %s4307_s4, 1 }
 0x56d   : > { %v2184_v17 = vpack.c.bf16 %v2130_v15, %v2130_v15  ;;  %v3285_v4 = vpop.f32.mrb[41].mxu0  ;;  %v2179_v20 = vpop.f32.mrb[34].mxu1  ;;  %s4308_s14 = sld [smem:[#allocation24_spill]] (!%p2992_p1)  ;;  %s4309_s22 = sld [smem:[#allocation25_spill]] (!%p2992_p1) }
 0x56e   : > { %v2133_v21 = vpop.f32.mrb[42].mxu0  ;;  %v3292_v22 = vpop.f32.mrb[35].mxu1  ;;  %3314 = vmatmul.mubr.msk.bf16.vlgmr.msra.gmra.mrb[40].mxu1 %vm1763_vm3, %v2185_v14 }
 0x56f   : > { %v3286_v23 = vpop.f32.mrb[43].mxu0  ;;  %3308 = vmatmul.mubr.msk.bf16.vlgmr.msra.gmra.mrb[48].mxu0 %vm1763_vm3, %v2184_v17  ;;  %3345 = vmatprep.mubr.msk.bf16.mxu1 %vm3613_vm2, %v3612_v10 }
 0x570   : > { %3325 = vmatprep.mubr.msk.bf16.mxu0 %vm3613_vm2, %v3612_v10  ;;  %3318 = vmatpush3.bf16.msra.mxu0 %v3477_v52 }
 0x571   : > { %3319 = vmatprep.subr.bf16.mxu0 %v3612_v10  ;;  %3330 = vmatpush3.bf16.msra.mxu1 %v3481_v1 }
 0x572   : > { %3331 = vmatprep.subr.bf16.mxu1 %v3612_v10 }
 0x574   : > { %3320 = vmatpush3.bf16.msra.mxu0 %v3478_v53 }
 0x575   : > { %3321 = vmatprep.subr.bf16.mxu0 %v3612_v10  ;;  %3332 = vmatpush3.bf16.msra.mxu1 %v3482_v2 }
 0x576   : > { %3333 = vmatprep.subr.bf16.mxu1 %v3612_v10 }
 0x578   : > { %3322 = vmatpush3.bf16.msra.mxu0 %v3479_v54 }
 0x579   : > { %3323 = vmatprep.subr.bf16.mxu0 %v3612_v10  ;;  %3334 = vmatpush3.bf16.msra.mxu1 %v3483_v3 }
 0x57a   : > { %3335 = vmatprep.subr.bf16.mxu1 %v3612_v10 }
 0x57c   : > { %3324 = vmatpush3.bf16.msra.mxu0 %v3480_v55 }
 0x57d   : > { %3336 = vmatpush3.bf16.msra.mxu1 %v3484_v5 }
 0x57e   : > { %3337 = vmatprep.subr.bf16.mxu1 %v3612_v10 }
 0x581   : > { %3338 = vmatpush3.bf16.msra.mxu1 %v3485_v6 }
 0x582   : > { %3339 = vmatprep.subr.bf16.mxu1 %v3612_v10 }
 0x585   : > { %3340 = vmatpush3.bf16.msra.mxu1 %v3486_v7 }
 0x586   : > { %3341 = vmatprep.subr.bf16.mxu1 %v3612_v10 }
 0x589   : > { %3342 = vmatpush3.bf16.msra.mxu1 %v3487_v8 }
 0x58a   : > { %3343 = vmatprep.subr.bf16.mxu1 %v3612_v10 }
 0x58d   : > { %3344 = vmatpush3.bf16.msra.mxu1 %v3488_v9 }
 0x631   : > { %v2237_v24 = vpop.f32.mrb[44].mxu0 }
 0x632   : > { %v3297_v26 = vpop.f32.mrb[45].mxu0 }
 0x633   : > { %v2240_v27 = vpop.f32.mrb[46].mxu0 }
 0x634   : > { %v3298_v28 = vpop.f32.mrb[47].mxu0 }
 0x639   : > { %v2286_v29 = vpop.f32.mrb[36].mxu1 }
 0x63a   : > { %v2390_v30 = vadd.f32 %v2286_v29, %v2237_v24  ;;  %v3303_v18 = vpop.f32.mrb[37].mxu1  ;;  %v2983_v24 = vld [vmem:[%s699_s30] ss:$0 sm:$0xff] }
 0x63b   : > { %v2289_v19 = vpop.f32.mrb[38].mxu1 }
 0x63c   : > { %v3304_v32 = vpop.f32.mrb[39].mxu1 }
 0x641   : > { %v2384_v33 = vpop.f32.mrb[40].mxu1 }
 0x642   : > { %v2335_v34 = vpop.f32.mrb[48].mxu0  ;;  %v3315_v25 = vpop.f32.mrb[41].mxu1 }
 0x643   : > { %v2391_v35 = vadd.f32 %v2390_v30, %v2335_v34  ;;  %v3309_v36 = vpop.f32.mrb[49].mxu0  ;;  %v2387_v37 = vpop.f32.mrb[42].mxu1 }
 0x644   : > { %v2338_v39 = vpop.f32.mrb[50].mxu0  ;;  %v3316_v40 = vpop.f32.mrb[43].mxu1 }
 0x645   : > { %v2392_v41 = vadd.f32 %v2391_v35, %v2384_v33  ;;  %v3310_v42 = vpop.f32.mrb[51].mxu0  ;;  %v2993_v40 = vld [vmem:[%s4308_s14] ss:$0 sm:$0xff] (!%p2992_p1) }
 0x646   : > { %v2994_v42 = vld [vmem:[%s4309_s22] ss:$0 sm:$0xff] (!%p2992_p1) }
 0x647   : > { %v2400_v43 = vadd.f32 %v2973_v38, %v2392_v41 }
 0x649   : > { %v4124_v45 = vadd.f32 %v3513_v44, %v2400_v43 }
 0x64b   : > { %v2404_v46 = vsel %vm717_vm1, %v4124_v45, 0.0 }
 0x64c   : > { %2405 = vadd.xlane.f32.xlu0 %v2404_v46 }
 0x6d9   : > { %v2406_v47 = vpop.xlane.xlu0 %2405 }
 0x6da   : > { %v2407_v48 = vmul.f32 0.015625, %v2406_v47 }
 0x6dc   : > { %v2408_v49 = vsub.f32 %v4124_v45, %v2407_v48 }
 0x6de   : > { %v2409_v50 = vmul.f32 %v2408_v49, %v2408_v49 }
 0x6e0   : > { %v2410_v51 = vsel %vm717_vm1, %v2409_v50, 0.0 }
 0x6e1   : > { %2411 = vadd.xlane.f32.xlu1 %v2410_v51 }
 0x76e   : > { %v2412_v56 = vpop.xlane.xlu1 %2411 }
 0x76f   : > { %v2413_v57 = vmul.f32 0.015625, %v2412_v56 }
 0x771   : > { %v2414_v58 = vadd.f32 1e-05, %v2413_v57 }
 0x773   : > { %3507 = vrsqrt.f32 %v2414_v58 }
 0x77d   : > { %v3508_v59 = vpop.eup %3507 }
 0x77e   : > { %v2416_v61 = vmul.f32 %v3508_v59, %v2408_v49 }
 0x780   : > { %v2423_v31 = vmul.f32 %v2974_v60, %v2416_v61 }
 0x782   : > { %v2430_v63 = vadd.f32 %v2975_v62, %v2423_v31 }
 0x784   : > { %v2431_v0 = vpack.c.bf16 %v2430_v63, %v2430_v63 }
 0x786   : > { %3326 = vmatmul.mubr.msk.bf16.vlgmr.msra.gmra.mrb[52].mxu0 %vm717_vm1, %v2431_v0 }
 0x859   : > { %v2508_v13 = vpop.f32.mrb[52].mxu0 }
 0x85a   : > { %v2509_v12 = vadd.f32 %v2976_v11, %v2508_v13  ;;  %v3327_v15 = vpop.f32.mrb[53].mxu0 }
 0x85b   : > { %v2511_v14 = vpop.f32.mrb[54].mxu0 }
 0x85c   : > { %v2982_v16 = vmul.f32 -1.702, %v2509_v12  ;;  %v3328_v17 = vpop.f32.mrb[55].mxu0 }
 0x85e   : > { %v2516_v4 = vmul.f32 1.442695, %v2982_v16 }
 0x860   : > { %3509 = vpow2.f32 %v2516_v4 }
 0x86a   : > { %v3510_v20 = vpop.eup %3509 }
 0x86b   : > { %v2518_v21 = vadd.f32 1.0, %v3510_v20 }
 0x86d   : > { %3511 = vrcp.f32 %v2518_v21 }
 0x877   : > { %v3512_v10 = vpop.eup %3511 }
 0x878   : > { %v2521_v22 = vmul.f32 %v3512_v10, %v2509_v12 }
 0x87a   : > { %v2522_v23 = vpack.c.bf16 %v2521_v22, %v2521_v22 }
 0x87c   : > { %3346 = vmatmul.mubr.bf16.vlgmr.msra.gmra.mrb[44].mxu1 %v2522_v23 }
 0x94e   : > { %2639 = sbr.rel (%p2992_p1) target bundleno = 2702 (0xa8e), region = 88 }
 0x94f   : > { %v2628_v26 = vpop.f32.mrb[44].mxu1 }
 0x950   : > { %v2629_v27 = vadd.f32 %v2983_v24, %v2628_v26  ;;  %v3347_v28 = vpop.f32.mrb[45].mxu1 }
 0x951   : > { %v2631_v29 = vpop.f32.mrb[46].mxu1 }
 0x952   : > { %v2634_v30 = vadd.f32 %v2629_v27, %v4124_v45  ;;  %v3348_v18 = vpop.f32.mrb[47].mxu1 }
 0x954   : > { %2635 = vst.msk [vmem:[#allocation2] sm:$0xff] %vm717_vm1, %v2634_v30  ;;  %v2642_v19 = vsel (!%p2992_p1), %vm717_vm1, %v2634_v30, 0.0 }
 0x955   : > { %2643 = vadd.xlane.f32.xlu0 %v2642_v19 }
 0x9e2   : > { %v2644_v32 = vpop.xlane.xlu0 %2643 }
 0x9e3   : > { %v2645_v33 = vmul.f32 0.015625, %v2644_v32 }
 0x9e5   : > { %v2646_v34 = vsub.f32 %v2634_v30, %v2645_v33 }
 0x9e7   : > { %v2647_v25 = vmul.f32 %v2646_v34, %v2646_v34 }
 0x9e9   : > { %v2648_v35 = vsel %vm717_vm1, %v2647_v25, 0.0 }
 0x9ea   : > { %2649 = vadd.xlane.f32.xlu0 %v2648_v35 }
 0xa77   : > { %v2650_v36 = vpop.xlane.xlu0 %2649 }
 0xa78   : > { %v2651_v37 = vmul.f32 0.015625, %v2650_v36 }
 0xa7a   : > { %v2652_v38 = vadd.f32 1e-05, %v2651_v37 }
 0xa7c   : > { %3514 = vrsqrt.f32 %v2652_v38 }
 0xa86   : > { %v3515_v39 = vpop.eup %3514 }
 0xa87   : > { %v2654_v41 = vmul.f32 %v3515_v39, %v2646_v34 }
 0xa89   : > { %v2661_v43 = vmul.f32 %v2993_v40, %v2654_v41 }
 0xa8b   : > { %v2668_v44 = vadd.f32 %v2994_v42, %v2661_v43 }
 0xa8d   : > { %2669 = vst.msk [vmem:[%s649_s19] sm:$0xff] %vm717_vm1, %v2668_v44 }
 0xa8e PF: > { %s4310_s24 = sld [smem:[#allocation10_spill]]  ;;  %s4311_s28 = sld [smem:[#allocation7_spill]] }
 0xa8f   : > { %s4313_s25 = sld [smem:[#allocation26_spill]]  ;;  %s2684_s21 = sshll.u32 %s649_s19, 4  ;;  %s2685_s21 = int_to_ptr.vmem [resolvable:$true] %s2684_s21 }
 0xa90   : > { %s3516_s13 = scalar_lea.vmem %s2685_s21, 128  ;;  %s3615_s5 = smov [#allocation3]  }
 0xa91   : > { %p3517_p2 = scmp.ne.s32.totalorder %s2685_s21, %s3516_s13  ;;  %s3520_s4 = sshll.u32 %s3615_s5, 4  ;;  %s3521_s4 = int_to_ptr.vmem [resolvable:$false] %s3520_s4 }
 0xa92   : > { %s3522_s18 = scalar_lea.vmem %s3521_s4, 256  ;;  %p3523_p6 = scmp.lt.s32.totalorder %s2685_s21, %s3521_s4 }
 0xa93   : > { %p3518_p4 = pnand %p3517_p2, %p3745_p3  ;;  %p3524_p7 = scmp.lt.s32.totalorder %s3522_s18, %s3516_s13 }
 0xa94   : > { %s2996_s16 = sshll.u32 %s4310_s24, 7  ;;  %s4315_s3 = sand.u32 1, %s4311_s28  }
 0xa95   : > { %s4314_s0 = smov %s4313_s25  ;;  %s4191_s2 = scalar_lea.hbm %s4313_s25, %s2996_s16 }
 0xa96   : > { %s2671_s26 = scalar_lea.sflag [#allocation4], %s4315_s3  ;;  %p3519_p5 = pneg %p3518_p4 }
 0xa97   : > { %p3525_p8 = por %p3524_p7, %p3523_p6 }
 0xa99   : > { %p3526_p10 = pnand %p3525_p8, %p3519_p5 }
 0xa9b   : > { %3529 = shalt.err (!%p3526_p10)
}
 0xa9c   : > { %s3530_s23 = scalar_lea.hbm %s4191_s2, 128  ;;  %s3534_s14 = scalar_lea.hbm %s4314_s0, 256 }
 0xa9d   : > { %p3531_p11 = scmp.ne.s32.totalorder %s4191_s2, %s3530_s23  ;;  %p3535_p0 = scmp.lt.u32.totalorder %s4191_s2, %s4314_s0 }
 0xa9e   : > { %p3536_p1 = scmp.lt.u32.totalorder %s3534_s14, %s3530_s23  ;;  %p3538_p4 = scmp.lt.u32.totalorder %s3530_s23, %s4191_s2 }
 0xa9f   : > { %p3532_p12 = pnand %p3531_p11, %p3745_p3 }
 0xaa0   : > { %p3537_p2 = por %p3536_p1, %p3535_p0 }
 0xaa1   : > { %p3533_p13 = pneg %p3532_p12 }
 0xaa2   : > { %p3539_p5 = por %p3538_p4, %p3537_p2 }
 0xaa4   : > { %p3540_p6 = pnand %p3539_p5, %p3533_p13 }
 0xaa6   : > { %3543 = shalt.err (!%p3540_p6)
}
 0xaa7   : > { %3350 = dma.vmem_to_hbm [thread:$0]  (%p3745_p3), %s2685_s21, 128, %s4191_s2, %s2671_s26  }
 0xaa8 PF: > { %s4316_s22 = sld [smem:[#allocation13_spill]]  ;;  %s4317_s24 = sld [smem:[#allocation6_spill]] }
 0xaae   : > { %p3356_p7 = scmp.ge.s32.totalorder %s4316_s22, 2  ;;  %s2696_s16 = sand.u32 1, %s4317_s24  }
 0xaaf   : > { %s2697_s17 = scalar_lea.sflag [#allocation4], %s2696_s16 }
 0xab0   : > { %p3353_p8 = pnand %p3356_p7, %p3755_p9 }
 0xab2   : > { %3577 = dma.done.wait (!%p3353_p8), %s2697_s17, 128  }
 0xab3   : > { %3579 = vsyncadd (!%p3353_p8), %s2697_s17, 4294967168  ;;  %s28_s25 = sadd.s32 1, %s4316_s22   ;;  %s4319_s18 = sld [smem:[#allocation7_spill]] }
 0xab4   : > { %p25_p10 = scmp.ge.s32.totalorder %s28_s25, 6   ;;  %s4320_s19 = sld [smem:[#allocation8_spill]] }
 0xab5   : > { %s4321_s20 = sld [smem:[#allocation18_spill]]  ;;  %s4322_s21 = sld [smem:[#allocation11_spill]] }
 0xab6   : > { %s4323_s22 = sld [smem:[#allocation12_spill]]  ;;  %s4324_s23 = sld [smem:[#allocation14_spill]] }
 0xab7   : > { %s4325_s24 = sld [smem:[#allocation16_spill]]  ;;  %27 = sbr.rel (!%p25_p10) target bundleno = 14 (0xe), region = 159 }
 0xabe   :  { %2702 = vsyncpa [#allocation4], 1 }
 0xabf   :  { %2704 = vsyncpa [#allocation4 + $0x1], 1 }

</bundles_post_ra>
